<compile_context>
chip_gen: v7x
topology: tpu7x:2x2x1
jax: 0.10.0
libtpu: 0.0.40
codegen_flags: <defaults>
</compile_context>

<pallas_src>
import functools

import jax
import jax.numpy as jnp
from jax import lax
from jax.experimental import pallas as pl
from jax.experimental.pallas import tpu as pltpu


# ----------------------------------------------------------------------------
# helpers
# ----------------------------------------------------------------------------
def _vmem_limit_bytes():
    """Generation-aware scoped-VMEM budget (v7x has only 64 MiB physical)."""
    try:
        cap = pltpu.get_tpu_info().vmem_capacity_bytes
        return int(min((3 * cap) // 4, 64 * 1024 * 1024))
    except Exception:
        return 32 * 1024 * 1024


_VMEM_LIMIT = _vmem_limit_bytes()


def _sublane_quantum(dtype):
    """Minimum sublane tile: 8 for 4-byte, 16 for 2-byte, 32 for 1-byte dtypes."""
    return {4: 8, 2: 16, 1: 32}.get(jnp.dtype(dtype).itemsize, 8)


def _pick_tile(dim, target, quantum):
    """Largest tile <= target that divides `dim` and respects `quantum`.
    Falls back to the full dimension (always a legal block size)."""
    if dim <= target:
        return dim
    t = (target // quantum) * quantum
    while t >= quantum:
        if dim % t == 0:
            return t
        t -= quantum
    return dim


# ----------------------------------------------------------------------------
# Tiled linear kernels: x (M, K) @ w (Nout, K)^T [+ b]  (PyTorch weight layout)
# ----------------------------------------------------------------------------
def _matmul_kernel(x_ref, w_ref, o_ref, acc_ref):
    @pl.when(pl.program_id(2) == 0)
    def _():
        acc_ref[...] = jnp.zeros_like(acc_ref)

    # Contract last dims of x and w (trans-B matmul) -> MXU handles this
    # natively; no HBM-level weight transpose needed.
    acc_ref[...] += lax.dot_general(
        x_ref[...], w_ref[...],
        dimension_numbers=(((1,), (1,)), ((), ())),
        preferred_element_type=jnp.float32)

    @pl.when(pl.program_id(2) == pl.num_programs(2) - 1)
    def _():
        o_ref[...] = acc_ref[...].astype(o_ref.dtype)


def _matmul_bias_kernel(x_ref, w_ref, b_ref, o_ref, acc_ref):
    @pl.when(pl.program_id(2) == 0)
    def _():
        acc_ref[...] = jnp.zeros_like(acc_ref)

    acc_ref[...] += lax.dot_general(
        x_ref[...], w_ref[...],
        dimension_numbers=(((1,), (1,)), ((), ())),
        preferred_element_type=jnp.float32)

    @pl.when(pl.program_id(2) == pl.num_programs(2) - 1)
    def _():
        o_ref[...] = (acc_ref[...] + b_ref[...]).astype(o_ref.dtype)


def pallas_linear(x2d, w, b=None, *, tm_target=512, tn_target=512, tk_target=512):
    """x2d: (M, K), w: (Nout, K) [PyTorch nn.Linear layout], b: optional (Nout,).
    Returns (M, Nout)."""
    M, K = x2d.shape
    Nout, Kw = w.shape
    assert K == Kw
    tm = _pick_tile(M, tm_target, _sublane_quantum(x2d.dtype))
    tn = _pick_tile(Nout, tn_target, 128)
    tk = _pick_tile(K, tk_target, 128)
    grid = (M // tm, Nout // tn, K // tk)

    in_specs = [
        pl.BlockSpec((tm, tk), lambda i, j, k: (i, k)),
        pl.BlockSpec((tn, tk), lambda i, j, k: (j, k)),
    ]
    if b is None:
        kernel = _matmul_kernel
        args = (x2d, w)
    else:
        kernel = _matmul_bias_kernel
        in_specs.append(pl.BlockSpec((1, tn), lambda i, j, k: (0, j)))
        args = (x2d, w, b.reshape(1, Nout))

    return pl.pallas_call(
        kernel,
        out_shape=jax.ShapeDtypeStruct((M, Nout), x2d.dtype),
        grid=grid,
        in_specs=in_specs,
        out_specs=pl.BlockSpec((tm, tn), lambda i, j, k: (i, j)),
        scratch_shapes=[pltpu.VMEM((tm, tn), jnp.float32)],
        compiler_params=pltpu.CompilerParams(
            dimension_semantics=("parallel", "parallel", "arbitrary"),
            vmem_limit_bytes=_VMEM_LIMIT,
        ),
    )(*args)


# ----------------------------------------------------------------------------
# Flash attention kernel (reads q/k/v out of the fused (B, N, 3C) qkv buffer,
# heads interleaved in the channel dim; scale already folded into q weights)
# ----------------------------------------------------------------------------
def _flash_attn_kernel(q_ref, k_ref, v_ref, o_ref,
                       m_sc, l_sc, acc_sc,
                       *, num_heads, head_dim, exp_dtype):
    # q_ref: (1, tq, C), k_ref / v_ref: (1, tk, C), o_ref: (1, tq, C)
    # grid = (B, q_tiles, kv_tiles); kv is the innermost reduction axis.
    kv = pl.program_id(2)

    @pl.when(kv == 0)
    def _():
        m_sc[...] = jnp.full_like(m_sc, -jnp.inf)
        l_sc[...] = jnp.zeros_like(l_sc)
        acc_sc[...] = jnp.zeros_like(acc_sc)

    # Static unrolled head loop: fine for small head counts.  For production
    # head counts (>= 8) switch to lax.fori_loop with pl.ds slices so live
    # ranges stay bounded.
    for h in range(num_heads):
        lo = h * head_dim
        hi = lo + head_dim
        q_h = q_ref[0, :, lo:hi]        # (tq, Dh), scale pre-folded into weight
        k_h = k_ref[0, :, lo:hi]        # (tk, Dh)
        v_h = v_ref[0, :, lo:hi]        # (tk, Dh)

        # s = q @ k^T : contract last dims of both -> no k transpose.
        s = lax.dot_general(
            q_h, k_h,
            dimension_numbers=(((1,), (1,)), ((), ())),
            preferred_element_type=jnp.float32)          # (tq, tk) f32

        m_prev = m_sc[h]                                 # (tq, 1) f32
        m_new = jnp.maximum(m_prev, s.max(axis=-1, keepdims=True))
        alpha = jnp.exp(m_prev - m_new)                  # f32 bookkeeping
        # exp in bf16 on bf16 inputs (v6e/v7x bf16 EUP); f32 otherwise.
        p = jnp.exp((s - m_new).astype(exp_dtype))       # (tq, tk)

        l_sc[h] = alpha * l_sc[h] + jnp.sum(
            p, axis=-1, keepdims=True, dtype=jnp.float32)
        pv = jnp.dot(p.astype(v_h.dtype), v_h,
                     preferred_element_type=jnp.float32)  # (tq, Dh) f32
        acc_sc[:, lo:hi] = alpha * acc_sc[:, lo:hi] + pv
        m_sc[h] = m_new

    @pl.when(kv == pl.num_programs(2) - 1)
    def _():
        # Normalize in place (exact reciprocal: EUP cost negligible), then one
        # lane-dense (tq, C) store -- no concatenate, no per-head HBM stores.
        for h in range(num_heads):
            lo = h * head_dim
            hi = lo + head_dim
            acc_sc[:, lo:hi] = acc_sc[:, lo:hi] * (1.0 / l_sc[h])
        o_ref[0] = acc_sc[...].astype(o_ref.dtype)


def pallas_flash_attention(qkv, num_heads, *, tq_target=256, tk_target=512):
    """qkv: (B, N, 3C) fused q|k|v (heads interleaved along each C chunk).
    Returns (B, N, C). Non-causal; 1/sqrt(head_dim) already folded into q."""
    B, N, C3 = qkv.shape
    C = C3 // 3
    assert C % num_heads == 0
    head_dim = C // num_heads
    sq = _sublane_quantum(qkv.dtype)
    tq = _pick_tile(N, tq_target, sq)   # on v5e a 128 q-tile is equally good
    tk = _pick_tile(N, tk_target, sq)   # big kv tile -> fewer softmax rescales
    exp_dtype = jnp.bfloat16 if qkv.dtype == jnp.bfloat16 else jnp.float32

    kernel = functools.partial(_flash_attn_kernel, num_heads=num_heads,
                               head_dim=head_dim, exp_dtype=exp_dtype)
    return pl.pallas_call(
        kernel,
        out_shape=jax.ShapeDtypeStruct((B, N, C), qkv.dtype),
        grid=(B, N // tq, N // tk),
        in_specs=[
            pl.BlockSpec((1, tq, C), lambda b, qi, ki: (b, qi, 0)),  # q cols
            pl.BlockSpec((1, tk, C), lambda b, qi, ki: (b, ki, 1)),  # k cols
            pl.BlockSpec((1, tk, C), lambda b, qi, ki: (b, ki, 2)),  # v cols
        ],
        out_specs=pl.BlockSpec((1, tq, C), lambda b, qi, ki: (b, qi, 0)),
        scratch_shapes=[
            pltpu.VMEM((num_heads, tq, 1), jnp.float32),  # running max
            pltpu.VMEM((num_heads, tq, 1), jnp.float32),  # running denom
            pltpu.VMEM((tq, C), jnp.float32),             # lane-dense acc
        ],
        compiler_params=pltpu.CompilerParams(
            dimension_semantics=("parallel", "parallel", "arbitrary"),
            vmem_limit_bytes=_VMEM_LIMIT,
        ),
    )(qkv, qkv, qkv)


# ----------------------------------------------------------------------------
# Full module forward (matches the PyTorch FlashAttention module)
# ----------------------------------------------------------------------------
def flash_attention_module(x, w_qkv, w_proj, b_proj, num_heads):
    """x: (B, N, C); w_qkv: (3C, C) (no bias); w_proj: (C, C); b_proj: (C,).
    Weights stay in PyTorch nn.Linear layout (Nout, K) -- never transposed."""
    B, N, C = x.shape
    head_dim = C // num_heads
    scale = 1.0 / (head_dim ** 0.5)
    x2d = x.reshape(B * N, C)

    # Fold the attention scale into the q rows of the fused qkv weight
    # (static weight transform; under jit with static weights this folds away).
    w_fused = jnp.concatenate([w_qkv[:C] * scale, w_qkv[C:]], axis=0)

    # One fused QKV projection: x streamed from HBM once, output (B, N, 3C).
    qkv = pallas_linear(x2d, w_fused).reshape(B, N, 3 * C)

    # Attention reads q/k/v directly out of the fused buffer via channel-offset
    # BlockSpecs -- no wrapper-side slicing, no head split/merge transposes.
    o = pallas_flash_attention(qkv, num_heads)            # (B, N, C)

    out = pallas_linear(o.reshape(B * N, C), w_proj, b_proj)
    return out.reshape(B, N, C)


# ----------------------------------------------------------------------------
# Pure-JAX reference (for verification)
# ----------------------------------------------------------------------------
def reference(x, w_qkv, w_proj, b_proj, num_heads):
    B, N, C = x.shape
    head_dim = C // num_heads
    qkv = (x @ w_qkv.T).reshape(B, N, 3, C)
    q, k, v = qkv[:, :, 0], qkv[:, :, 1], qkv[:, :, 2]
    q = q.reshape(B, N, num_heads, head_dim).transpose(0, 2, 1, 3)
    k = k.reshape(B, N, num_heads, head_dim).transpose(0, 2, 1, 3)
    v = v.reshape(B, N, num_heads, head_dim).transpose(0, 2, 1, 3)
    s = jnp.einsum("bhqd,bhkd->bhqk", q, k) / (head_dim ** 0.5)
    p = jax.nn.softmax(s, axis=-1)
    o = jnp.einsum("bhqk,bhkd->bhqd", p, v)
    o = o.transpose(0, 2, 1, 3).reshape(B, N, C)
    return o @ w_proj.T + b_proj


# ----------------------------------------------------------------------------
# Main
# ----------------------------------------------------------------------------
if __name__ == "__main__":
    B, N, dim, num_heads = 2, 512, 256, 4   # head_dim = 64; exercises tiling

    key = jax.random.PRNGKey(0)
    kx, kqkv, kwp, kbp = jax.random.split(key, 4)

    x = jax.random.normal(kx, (B, N, dim), dtype=jnp.float32)
    w_qkv = jax.random.normal(kqkv, (3 * dim, dim), dtype=jnp.float32) * 0.05
    w_proj = jax.random.normal(kwp, (dim, dim), dtype=jnp.float32) * 0.05
    b_proj = jax.random.normal(kbp, (dim,), dtype=jnp.float32) * 0.05

    out = flash_attention_module(x, w_qkv, w_proj, b_proj, num_heads)
    out = jax.block_until_ready(out)

    ref = reference(x, w_qkv, w_proj, b_proj, num_heads)
    assert out.shape == (B, N, dim)
    max_err = jnp.max(jnp.abs(out - ref))
    assert jnp.allclose(out, ref, atol=1e-2, rtol=1e-2), f"max abs err = {max_err}"

    print("KERNEL_OK")
</pallas_src>

<mosaic_0001>
module attributes {stable_mosaic.version = 11 : i64} {
  func.func @_matmul_kernel(%arg0: i32, %arg1: i32, %arg2: i32, %arg3: memref<512x256xf32, #tpu.memory_space<vmem>>, %arg4: memref<384x256xf32, #tpu.memory_space<vmem>>, %arg5: memref<512x384xf32, #tpu.memory_space<vmem>>, %arg6: memref<512x384xf32, #tpu.memory_space<vmem>>) attributes {dimension_semantics = [#tpu.dimension_semantics<parallel>, #tpu.dimension_semantics<parallel>, #tpu.dimension_semantics<arbitrary>], iteration_bounds = array<i64: 2, 2, 1>, scalar_prefetch = 0 : i64, scratch_operands = 1 : i64, tpu.core_type = #tpu.core_type<tc>, window_params = [{transform_indices = @transform_0, window_bounds = array<i64: 512, 256>}, {transform_indices = @transform_1, window_bounds = array<i64: 384, 256>}, {transform_indices = @transform_2, window_bounds = array<i64: 512, 384>}]} {
    %c0_i32 = arith.constant 0 : i32
    %0 = arith.cmpi eq, %arg2, %c0_i32 : i32
    %1 = arith.extui %0 : i1 to i32
    %c0_i32_0 = arith.constant 0 : i32
    %2 = arith.cmpi ne, %1, %c0_i32_0 : i32
    scf.if %2 {
      %cst_10 = arith.constant 0.000000e+00 : f32
      %12 = vector.broadcast %cst_10 : f32 to vector<512x384xf32>
      %c0_11 = arith.constant 0 : index
      %c0_12 = arith.constant 0 : index
      %13 = vector.load %arg6[%c0_11, %c0_12] : memref<512x384xf32, #tpu.memory_space<vmem>>, vector<512x384xf32>
      tpu.vector_store %arg6[%c0_11, %c0_12], %12 {strides = array<i32>} : memref<512x384xf32, #tpu.memory_space<vmem>>, vector<512x384xf32>,
    } else {
    }
    %c0 = arith.constant 0 : index
    %c0_1 = arith.constant 0 : index
    %3 = vector.load %arg6[%c0, %c0_1] : memref<512x384xf32, #tpu.memory_space<vmem>>, vector<512x384xf32>
    %c0_2 = arith.constant 0 : index
    %c0_3 = arith.constant 0 : index
    %4 = vector.load %arg3[%c0_2, %c0_3] : memref<512x256xf32, #tpu.memory_space<vmem>>, vector<512x256xf32>
    %c0_4 = arith.constant 0 : index
    %c0_5 = arith.constant 0 : index
    %5 = vector.load %arg4[%c0_4, %c0_5] : memref<384x256xf32, #tpu.memory_space<vmem>>, vector<384x256xf32>
    %cst = arith.constant dense<0.000000e+00> : vector<512x384xf32>
    %6 = tpu.matmul %4, %5, %cst {dimension_numbers = #tpu.dot_dimension_numbers<[1], [1], [0], [0], [0, 0, 1, 0], [], []>} : vector<512x256xf32>, vector<384x256xf32>, vector<512x384xf32> -> vector<512x384xf32>
    %7 = arith.addf %3, %6 : vector<512x384xf32>
    %c0_6 = arith.constant 0 : index
    %c0_7 = arith.constant 0 : index
    %8 = vector.load %arg6[%c0_6, %c0_7] : memref<512x384xf32, #tpu.memory_space<vmem>>, vector<512x384xf32>
    tpu.vector_store %arg6[%c0_6, %c0_7], %7 {strides = array<i32>} : memref<512x384xf32, #tpu.memory_space<vmem>>, vector<512x384xf32>,
    %c0_i32_8 = arith.constant 0 : i32
    %9 = arith.cmpi eq, %arg2, %c0_i32_8 : i32
    %10 = arith.extui %9 : i1 to i32
    %c0_i32_9 = arith.constant 0 : i32
    %11 = arith.cmpi ne, %10, %c0_i32_9 : i32
    scf.if %11 {
      %c0_10 = arith.constant 0 : index
      %c0_11 = arith.constant 0 : index
      %12 = vector.load %arg6[%c0_10, %c0_11] : memref<512x384xf32, #tpu.memory_space<vmem>>, vector<512x384xf32>
      %c0_12 = arith.constant 0 : index
      %c0_13 = arith.constant 0 : index
      %13 = vector.load %arg5[%c0_12, %c0_13] : memref<512x384xf32, #tpu.memory_space<vmem>>, vector<512x384xf32>
      tpu.vector_store %arg5[%c0_12, %c0_13], %12 {strides = array<i32>} : memref<512x384xf32, #tpu.memory_space<vmem>>, vector<512x384xf32>,
    } else {
    }
    return
  }
  func.func @transform_0(%arg0: i32, %arg1: i32, %arg2: i32) -> (i32, i32) {
    %c0_i32 = arith.constant 0 : i32
    return %arg0, %arg2 : i32, i32
  }
  func.func @transform_1(%arg0: i32, %arg1: i32, %arg2: i32) -> (i32, i32) {
    %c0_i32 = arith.constant 0 : i32
    return %arg1, %arg2 : i32, i32
  }
  func.func @transform_2(%arg0: i32, %arg1: i32, %arg2: i32) -> (i32, i32) {
    %c0_i32 = arith.constant 0 : i32
    return %arg0, %arg1 : i32, i32
  }
}

</mosaic_0001>

<bundles_post_ra>
// kernel: tpu_custom_call.1
= control target key start
LH: loop header
LB: loop body
LE: loop exit
PB: predicated region body
PF: predicated region fallthrough
CT: control target
= control target key end

     0   :  { %s4366_s0 = inlined_call_operand.hbm [shape: f32[1024,256], index: 0, kind: input, shape index: {}]   ;;  %s4367_s1 = inlined_call_operand.hbm [shape: f32[768,256], index: 1, kind: input, shape index: {}]   ;;  %s4368_s2 = inlined_call_operand.hbm [shape: f32[1024,768], index: 2, kind: output, shape index: {}]  }
   0x1   :  { %4381 = sst [smem:[#allocation17_spill]] %s4366_s0 }
   0x2   :  { %4382 = sst [smem:[#allocation18_spill]] %s4368_s2 }
   0x3   :  { %7 = vsyncpa [#allocation4], 0 }
   0x4   :  { %9 = vsyncpa [#allocation4 + $0x1], 0 }
   0x5   :  { %10 = vsyncpa [#allocation7], 0 }
   0x6   :  { %12 = vsyncpa [#allocation7 + $0x1], 0 }
   0x7   :  { %13 = vsyncpa [#allocation5], 0 }
   0x8   :  { %15 = vsyncpa [#allocation5 + $0x1], 0  ;;  %s3085_s9 = smov 0   ;;  %s3087_s10 = smov 0  }
   0x9   :  { %s3089_s11 = smov 0   ;;  %s3091_s12 = smov 0  }
   0xa   :  { %s3093_s13 = smov 0   ;;  %s3095_s14 = smov 0  }
   0xb   :  { %s3097_s15 = smov 0   ;;  %s3099_s16 = smov 0  }
   0xc   :  { %s3101_s17 = smov 0   ;;  %s3103_s18 = smov 0  }
   0xd   :  { %s3105_s19 = smov 0   ;;  %s3107_s20 = smov 0  }
   0xe   :  { %s3109_s21 = smov 0   ;;  %s3111_s22 = smov 0  }
   0xf LB: > { %4383 = sst [smem:[#allocation12_spill]] %s3048_s19  ;;  %s2592_s23 = sadd.s32 4294967295, %s3060_s22   ;;  %s3060_s22 = sphi %s3111_s22, %s21_s22   ;;  %s3056_s21 = sphi %s3109_s21, %s4415_s21   ;;  %s3052_s20 = sphi %s3107_s20, %s4414_s20   ;;  %s3048_s19 = sphi %s3105_s19, %s4413_s19   ;;  %s3044_s18 = sphi %s3103_s18, %s4412_s18   ;;  %s3040_s17 = sphi %s3101_s17, %s4425_s17   ;;  %s3036_s16 = sphi %s3099_s16, %s4424_s16   ;;  %s3032_s15 = sphi %s3097_s15, %s4423_s15   ;;  %s3028_s14 = sphi %s3095_s14, %s4422_s14   ;;  %s3024_s13 = sphi %s3093_s13, %s4421_s13   ;;  %s3020_s12 = sphi %s3091_s12, %s4420_s12   ;;  %s3016_s11 = sphi %s3089_s11, %s4419_s11   ;;  %s3012_s10 = sphi %s3087_s10, %s4418_s10   ;;  %s3008_s9 = sphi %s3085_s9, %s4417_s9  }
  0x10   : > { %4384 = sst [smem:[#allocation13_spill]] %s3052_s20  ;;  %s40_s24 = sadd.s32 1, %s3056_s21 }
  0x11   : > { %4385 = sst [smem:[#allocation14_spill]] %s3056_s21  ;;  %p56_p0 = scmp.ne.s32.totalorder %s3040_s17, %s3036_s16 }
  0x12   : > { %p4370_p1 = scmp.eq.s32.totalorder %s3060_s22, 0  ;;  %p62_p2 = scmp.ne.s32.totalorder %s3036_s16, %s3032_s15 }
  0x13   : > { %p3160_p3 = scmp.eq.s32.totalorder %s2592_s23, 0  ;;  %p3164_p4 = scmp.eq.s32.totalorder %s2592_s23, 3 }
  0x14   : > { %p58_p5 = por %p4370_p1, %p56_p0  ;;  %p4369_p7 = scmp.lt.s32.totalorder %s3060_s22, 4 }
  0x15   : > { %s4387_s27 = scalar_select %p3164_p4, 1, 0 }
  0x16   : > { %p3172_p6 = por %p3160_p3, %p62_p2  ;;  %s142_s29 = sand.u32 1, %s3040_s17  }
  0x17   : > { %s2610_s30 = sshll.u32 %s3056_s21, 14  ;;  %s2596_s3 = sshll.u32 %s142_s29, 10 }
  0x18   : > { %s4388_s28 = scalar_select %p3172_p6, 1, 0 }
  0x19   : > { %s4389_s0 = sld [smem:[#allocation17_spill]]  ;;  %s146_s7 = scalar_lea.vmem [#allocation3], %s2596_s3 }
  0x1a   : > { %s156_s8 = sshll.u32 %s146_s7, 4  ;;  %p3186_p8 = pnand %p4369_p7, %p58_p5  ;;  %s3190_s8 = int_to_ptr.vmem [resolvable:$true] %s156_s8 }
  0x1b   : > { %s3192_s23 = scalar_lea.sflag [#allocation4], %s142_s29 }
  0x1c   : > { %p2852_p10 = pneg %p3186_p8 }
  0x1f   : > { %s3182_s6 = scalar_lea.hbm %s4389_s0, %s2610_s30  ;;  %s2855_s5 = scalar_lea.hbm %s4389_s0, 32768 }
  0x20   : > { %s2850_s4 = scalar_lea.hbm %s3182_s6, 16384  ;;  %p2856_p13 = scmp.lt.u32.totalorder %s3182_s6, %s4389_s0 }
  0x21   : > { %p2851_p9 = scmp.ne.s32.totalorder %s3182_s6, %s2850_s4  ;;  %p2857_p0 = scmp.lt.u32.totalorder %s2855_s5, %s2850_s4 }
  0x22   : > { %p2859_p5 = scmp.lt.u32.totalorder %s2850_s4, %s3182_s6 }
  0x23   : > { %p2853_p11 = pnand %p2852_p10, %p2851_p9  ;;  %p2858_p2 = por %p2857_p0, %p2856_p13 }
  0x25   : > { %p2854_p12 = pneg %p2853_p11  ;;  %p2860_p7 = por %p2859_p5, %p2858_p2 }
  0x27   : > { %p2861_p1 = pnand %p2860_p7, %p2854_p12 }
  0x29   : > { %2864 = shalt.err (!%p2861_p1)
}
  0x2a   : > { %s2865_s29 = scalar_lea.vmem %s3190_s8, 16384  ;;  %s3062_s30 = smov [#allocation3]  }
  0x2b   : > { %p2866_p9 = scmp.ne.s32.totalorder %s3190_s8, %s2865_s29  ;;  %s2870_s3 = sshll.u32 %s3062_s30, 4  ;;  %s2871_s3 = int_to_ptr.vmem [resolvable:$false] %s2870_s3 }
  0x2c   : > { %s2872_s25 = scalar_lea.vmem %s2871_s3, 32768  ;;  %p2873_p4 = scmp.lt.s32.totalorder %s3190_s8, %s2871_s3 }
  0x2d   : > { %p2868_p11 = pnand %p2866_p9, %p2852_p10  ;;  %p2874_p13 = scmp.lt.s32.totalorder %s2872_s25, %s2865_s29 }
  0x2f   : > { %p2869_p6 = pneg %p2868_p11  ;;  %p2875_p0 = por %p2874_p13, %p2873_p4 }
  0x31   : > { %p2876_p2 = pnand %p2875_p0, %p2869_p6 }
  0x33   : > { %2879 = shalt.err (!%p2876_p2)
}
  0x34   : > { %s4372_s4 = smov 256   ;;  %s4373_s5 = smov 16  }
  0x35   : > { %2723 = dma.hbm_to_vmem [thread:$0]  (!%p3186_p8), %s3182_s6, 16384, %s3190_s8, %s3192_s23, %s4372_s4, %s4372_s4, %s4373_s5  }
  0x36   : > { %p2602_p1 = scmp.ge.s32.totalorder %s3060_s22, 1  ;;  %p188_p4 = scmp.lt.s32.totalorder %s3060_s22, 5 }
  0x37   : > { %s2593_s29 = sadd.s32 4294967294, %s3060_s22   ;;  %s36_s30 = sadd.s32 1, %s3052_s20 }
  0x38   : > { %p3225_p6 = pnand %p2602_p1, %p188_p4  ;;  %s77_s3 = sadd.s32 1, %s3028_s14 }
  0x39   : > { %p38_p7 = scmp.ge.s32.totalorder %s36_s30, 2  ;;  %p84_p10 = scmp.ne.s32.totalorder %s3028_s14, %s3024_s13 }
  0x3a   : > { %p90_p12 = scmp.ne.s32.totalorder %s3024_s13, %s3020_s12  ;;  %s105_s15 = sadd.s32 1, %s3016_s11 }
  0x3b   : > { %s4427_s30 = smov (%p38_p7, %s36_s30), 0  ;;  %s4429_s24 = smov (!%p38_p7, %s40_s24), %s3056_s21 }
  0x3c   : > { %4392 = sst [smem:[#allocation15_spill]] %s4427_s30  ;;  %s72_s6 = ssub.s32 %s3052_s20, %s4427_s30 }
  0x3d   : > { %p4393_p8 = scmp.eq.s32.totalorder %s3060_s22, 0  ;;  %p42_p9 = scmp.ge.s32.totalorder %s4429_s24, 2 }
  0x3e   : > { %p75_p11 = scmp.eq.s32.totalorder %s72_s6, 0  ;;  %p3252_p13 = por %p90_p12, %p3160_p3 }
  0x3f   : > { %p3246_p5 = por %p84_p10, %p4393_p8  ;;  %p115_p0 = scmp.ne.s32.totalorder %s3016_s11, %s3012_s10 }
  0x40   : > { %s4395_s12 = scalar_select %p3252_p13, 1, 0 }
  0x41   : > { %s4431_s24 = smov (%p42_p9, %s4429_s24), 0  ;;  %p4397_p2 = scmp.ne.s32.totalorder %s4387_s27, 0 }
  0x42   : > { %4396 = sst [smem:[#allocation16_spill]] %s4431_s24  ;;  %s44_s25 = ssub.s32 %s3056_s21, %s4431_s24 }
  0x43   : > { %s3261_s23 = scalar_select %p75_p11, %s3028_s14, %s77_s3  }
  0x44   : > { %p3267_p1 = por %p4397_p2, %p115_p0  ;;  %p47_p4 = scmp.eq.s32.totalorder %s44_s25, 0 }
  0x45   : > { %s102_s26 = sor.u32 %s72_s6, %s44_s25  ;;  %p121_p7 = scmp.ne.s32.totalorder %s3012_s10, %s3008_s9 }
  0x46   : > { %s4398_s4 = scalar_select %p3267_p1, 1, 0 }
  0x47   : > { %p103_p3 = scmp.eq.s32.totalorder %s102_s26, 0  ;;  %s4399_s5 = sadd.s32 1, %s3040_s17 }
  0x48   : > { %s3276_s0 = scalar_select %p47_p4, %s3040_s17, %s4399_s5  }
  0x49   : > { %s3279_s30 = scalar_select %p103_p3, %s3016_s11, %s105_s15  }
  0x4a   : > { %p122_p10 = scmp.eq.s32.totalorder %s2593_s29, 3  ;;  %s166_s2 = sand.u32 1, %s3028_s14  }
  0x4b   : > { %s2710_s19 = smul.u32 768, %s166_s2  ;;  %p4401_p8 = scmp.lt.s32.totalorder %s3060_s22, 4 }
  0x4c   : > { %p3282_p12 = por %p122_p10, %p121_p7  ;;  %s2613_s27 = smul.u32 12288, %s3052_s20 }
  0x4d   : > { %p3291_p9 = pnand %p4401_p8, %p3246_p5  ;;  %s170_s29 = scalar_lea.vmem [#allocation6], %s2710_s19 }
  0x4e   : > { %s4400_s3 = scalar_select %p3282_p12, 1, 0 }
  0x4f   : > { %s3298_s5 = scalar_lea.hbm %s4367_s1, %s2613_s27  ;;  %s180_s15 = sshll.u32 %s170_s29, 4  ;;  %s3300_s15 = int_to_ptr.vmem [resolvable:$true] %s180_s15 }
  0x50   : > { %s3302_s8 = scalar_lea.sflag [#allocation7], %s166_s2  ;;  %s2880_s26 = scalar_lea.hbm %s3298_s5, 12288 }
  0x51   : > { %p2881_p5 = scmp.ne.s32.totalorder %s3298_s5, %s2880_s26  ;;  %p2882_p11 = pneg %p3291_p9 }
  0x52   : > { %s2885_s25 = scalar_lea.hbm %s4367_s1, 24576  ;;  %p2886_p4 = scmp.lt.u32.totalorder %s3298_s5, %s4367_s1 }
  0x53   : > { %p2883_p0 = pnand %p2882_p11, %p2881_p5  ;;  %p2887_p3 = scmp.lt.u32.totalorder %s2885_s25, %s2880_s26 }
  0x54   : > { %p2889_p10 = scmp.lt.u32.totalorder %s2880_s26, %s3298_s5 }
  0x55   : > { %p2884_p2 = pneg %p2883_p0  ;;  %p2888_p7 = por %p2887_p3, %p2886_p4 }
  0x57   : > { %p2890_p8 = por %p2889_p10, %p2888_p7 }
  0x59   : > { %p2891_p12 = pnand %p2890_p8, %p2884_p2 }
  0x5b   : > { %2894 = shalt.err (!%p2891_p12)
}
  0x5c   : > { %s2895_s2 = scalar_lea.vmem %s3300_s15, 12288  ;;  %s3065_s19 = smov [#allocation6]  }
  0x5d   : > { %p2896_p5 = scmp.ne.s32.totalorder %s3300_s15, %s2895_s2  ;;  %s2900_s29 = sshll.u32 %s3065_s19, 4  ;;  %s2901_s29 = int_to_ptr.vmem [resolvable:$false] %s2900_s29 }
  0x5e   : > { %s2902_s20 = scalar_lea.vmem %s2901_s29, 24576  ;;  %p2903_p13 = scmp.lt.s32.totalorder %s3300_s15, %s2901_s29 }
  0x5f   : > { %p2898_p0 = pnand %p2896_p5, %p2882_p11  ;;  %p2904_p4 = scmp.lt.s32.totalorder %s2902_s20, %s2895_s2 }
  0x61   : > { %p2899_p1 = pneg %p2898_p0  ;;  %p2905_p3 = por %p2904_p4, %p2903_p13 }
  0x63   : > { %p2906_p7 = pnand %p2905_p3, %p2899_p1 }
  0x65   : > { %2909 = shalt.err (!%p2906_p7)
}
  0x66   : > { %s4403_s21 = smov 16   ;;  %s4404_s26 = smov 256  }
  0x67   : > { %2726 = dma.hbm_to_vmem [thread:$0]  (!%p3291_p9), %s3298_s5, 12288, %s3300_s15, %s3302_s8, %s4404_s26, %s4404_s26, %s4403_s21  }
  0x68   : > { %192 = sbr.rel (%p3225_p6) target bundleno = 729 (0x2d9), region = 28  ;;  %s194_s27 = sand.u32 (!%p3225_p6), 1, %s3036_s16  }
  0x69   : > { %s2603_s6 = sshll.u32 (!%p3225_p6), %s194_s27, 10  ;;  %s195_s25 = scalar_lea.sflag (!%p3225_p6), [#allocation4], %s194_s27 }
  0x6a   : > { %s3336_s2 = scalar_lea.vmem (!%p3225_p6), [#allocation3], %s2603_s6  ;;  %p4405_p13 = scmp.ne.s32.totalorder (!%p3225_p6), %s4388_s28, 0 }
  0x6f   : > { %2995 = dma.done.wait (%p4405_p13), %s195_s25, 16384  }
  0x70   : > { %2997 = vsyncadd (%p4405_p13), %s195_s25, 4294950912  ;;  %s203_s24 = sand.u32 1, %s3024_s13   ;;  %p4406_p6 = scmp.ne.s32.totalorder %s4395_s12, 0 }
  0x71   : > { %s2711_s19 = smul.u32 768, %s203_s24  ;;  %s204_s5 = scalar_lea.sflag [#allocation7], %s203_s24 }
  0x73   : > { %s3343_s15 = scalar_lea.vmem [#allocation6], %s2711_s19 }
  0x74   : > { %2999 = dma.done.wait (%p4406_p6), %s204_s5, 12288  }
  0x75   : > { %3001 = vsyncadd (%p4406_p6), %s204_s5, 4294955008  ;;  %v756_v0 = vld [vmem:[%s3343_s15 + $0x8] sm:$0xff]  ;;  %v758_v1 = vld [vmem:[%s3343_s15 + $0x18] sm:$0xff]  ;;  %s230_s28 = sand.u32 1, %s3012_s10   ;;  %s4407_s8 = sld [smem:[#allocation12_spill]] }
  0x76   : > { %v755_v2 = vld [vmem:[%s3343_s15] sm:$0xff]  ;;  %v2614_v3 = vpack.c.bf16 %v758_v1, %v756_v0  ;;  %v757_v4 = vld [vmem:[%s3343_s15 + $0x10] sm:$0xff]  ;;  %v760_v5 = vld [vmem:[%s3343_s15 + $0x28] sm:$0xff]  ;;  %s2712_s7 = smul.u32 1536, %s230_s28  ;;  %s4408_s25 = sld [smem:[#allocation18_spill]] }
  0x77   : > { %v762_v6 = vld [vmem:[%s3343_s15 + $0x38] sm:$0xff]  ;;  %v2616_v7 = vpack.c.bf16 %v757_v4, %v755_v2  ;;  %v759_v9 = vld [vmem:[%s3343_s15 + $0x20] sm:$0xff]  ;;  %v761_v10 = vld [vmem:[%s3343_s15 + $0x30] sm:$0xff]  ;;  %s2465_s29 = smul.u32 3, %s3044_s18  ;;  %s4290_s24 = scalar_lea.sflag [#allocation5], %s230_s28 }
  0x78   : > { %v2618_v8 = vpack.c.bf16 %v762_v6, %v760_v5  ;;  %2615 = vmatprep.subr.bf16.mxu0 %v2614_v3  ;;  %v764_v11 = vld [vmem:[%s3343_s15 + $0x48] sm:$0xff]  ;;  %v766_v12 = vld [vmem:[%s3343_s15 + $0x58] sm:$0xff]  ;;  %v2620_v13 = vpack.c.bf16 %v761_v10, %v759_v9  ;;  %v763_v17 = vld [vmem:[%s3343_s15 + $0x40] sm:$0xff]  ;;  %s3960_s12 = scalar_lea.vmem [#allocation8], %s2712_s7  ;;  %p4409_p12 = scmp.ne.s32.totalorder %s4398_s4, 0 }
  0x79   : > { %2617 = vmatpush1.bf16.xpose.msra.mxu0 %v2616_v7  ;;  %v2622_v14 = vpack.c.bf16 %v766_v12, %v764_v11  ;;  %v820_v15 = vld [vmem:[%s3343_s15 + $0x208] sm:$0xff]  ;;  %v822_v16 = vld [vmem:[%s3343_s15 + $0x218] sm:$0xff]  ;;  %v819_v19 = vld [vmem:[%s3343_s15 + $0x200] sm:$0xff]  ;;  %s2473_s27 = sshll.u32 %s3960_s12, 4  ;;  %s3066_s5 = smov [#allocation8]   ;;  %s4284_s27 = int_to_ptr.vmem [resolvable:$true] %s2473_s27 }
  0x7a   : > { %2619 = vmatprep.subr.bf16.mxu0 %v2618_v8  ;;  %v2678_v18 = vpack.c.bf16 %v822_v16, %v820_v15  ;;  %v765_v20 = vld [vmem:[%s3343_s15 + $0x50] sm:$0xff]  ;;  %v768_v21 = vld [vmem:[%s3343_s15 + $0x68] sm:$0xff]  ;;  %v770_v23 = vld [vmem:[%s3343_s15 + $0x78] sm:$0xff]  ;;  %s2910_s19 = scalar_lea.vmem %s4284_s27, 24576 }
  0x7b   : > { %v821_v22 = vld [vmem:[%s3343_s15 + $0x210] sm:$0xff]  ;;  %v824_v25 = vld [vmem:[%s3343_s15 + $0x228] sm:$0xff]  ;;  %v826_v26 = vld [vmem:[%s3343_s15 + $0x238] sm:$0xff]  ;;  %v2624_v28 = vpack.c.bf16 %v765_v20, %v763_v17  ;;  %v2626_v29 = vpack.c.bf16 %v770_v23, %v768_v21  ;;  %s2713_s20 = smul.u32 384, %s4407_s8  ;;  %p2911_p1 = scmp.ne.s32.totalorder %s4284_s27, %s2910_s19 }
  0x7c   : > { %2679 = vmatprep.subr.bf16.mxu1 %v2678_v18  ;;  %v2680_v24 = vpack.c.bf16 %v821_v22, %v819_v19  ;;  %v2682_v27 = vpack.c.bf16 %v826_v26, %v824_v25  ;;  %v823_v30 = vld [vmem:[%s3343_s15 + $0x220] sm:$0xff]  ;;  %v825_v31 = vld [vmem:[%s3343_s15 + $0x230] sm:$0xff]  ;;  %v828_v32 = vld [vmem:[%s3343_s15 + $0x248] sm:$0xff] }
  0x7d   : > { %v830_v33 = vld [vmem:[%s3343_s15 + $0x258] sm:$0xff]  ;;  %v2684_v34 = vpack.c.bf16 %v825_v31, %v823_v30  ;;  %v767_v35 = vld [vmem:[%s3343_s15 + $0x60] sm:$0xff]  ;;  %v769_v36 = vld [vmem:[%s3343_s15 + $0x70] sm:$0xff]  ;;  %s2470_s21 = sadd.s32 %s2713_s20, %s2465_s29  ;;  %p2912_p9 = pnand %p2911_p1, %p4409_p12 }
  0x7e   : > { %2681 = vmatpush1.bf16.xpose.msra.mxu1 %v2680_v24  ;;  %v2686_v37 = vpack.c.bf16 %v830_v33, %v828_v32  ;;  %v772_v38 = vld [vmem:[%s3343_s15 + $0x88] sm:$0xff]  ;;  %v774_v39 = vld [vmem:[%s3343_s15 + $0x98] sm:$0xff]  ;;  %v2628_v40 = vpack.c.bf16 %v769_v36, %v767_v35  ;;  %v827_v42 = vld [vmem:[%s3343_s15 + $0x240] sm:$0xff]  ;;  %s2606_s26 = sshll.u32 %s2470_s21, 7 }
  0x7f   : > { %2683 = vmatprep.subr.bf16.mxu1 %v2682_v27  ;;  %v2630_v41 = vpack.c.bf16 %v774_v39, %v772_v38  ;;  %v829_v43 = vld [vmem:[%s3343_s15 + $0x250] sm:$0xff]  ;;  %v832_v44 = vld [vmem:[%s3343_s15 + $0x268] sm:$0xff]  ;;  %v834_v45 = vld [vmem:[%s3343_s15 + $0x278] sm:$0xff]  ;;  %p2913_p11 = pneg %p2912_p9 }
  0x80   : > { %v2688_v46 = vpack.c.bf16 %v829_v43, %v827_v42  ;;  %v771_v47 = vld [vmem:[%s3343_s15 + $0x80] sm:$0xff]  ;;  %v773_v48 = vld [vmem:[%s3343_s15 + $0x90] sm:$0xff]  ;;  %v2690_v49 = vpack.c.bf16 %v834_v45, %v832_v44  ;;  %v776_v50 = vld [vmem:[%s3343_s15 + $0xa8] sm:$0xff] }
  0x81   : > { %2621 = vmatpush1.bf16.xpose.msra.mxu0 %v2620_v13  ;;  %v778_v51 = vld [vmem:[%s3343_s15 + $0xb8] sm:$0xff]  ;;  %v2632_v52 = vpack.c.bf16 %v773_v48, %v771_v47  ;;  %v628_v53 = vld [vmem:[%s3336_s2 + $0x8] sm:$0xff]  ;;  %v831_v55 = vld [vmem:[%s3343_s15 + $0x260] sm:$0xff] }
  0x82   : > { %2623 = vmatprep.subr.bf16.mxu0 %v2622_v14  ;;  %v2634_v54 = vpack.c.bf16 %v778_v51, %v776_v50  ;;  %v833_v56 = vld [vmem:[%s3343_s15 + $0x270] sm:$0xff]  ;;  %915 = vmatprep.mubr.f32.mxu0 %v628_v53  ;;  %v836_v57 = vld [vmem:[%s3343_s15 + $0x288] sm:$0xff]  ;;  %v838_v58 = vld [vmem:[%s3343_s15 + $0x298] sm:$0xff] }
  0x83   : > { %1364 = vmatprep.mubr.f32.mxu1 %v628_v53  ;;  %v2692_v59 = vpack.c.bf16 %v833_v56, %v831_v55  ;;  %v775_v60 = vld [vmem:[%s3343_s15 + $0xa0] sm:$0xff]  ;;  %v777_v61 = vld [vmem:[%s3343_s15 + $0xb0] sm:$0xff]  ;;  %v2694_v62 = vpack.c.bf16 %v838_v58, %v836_v57  ;;  %v780_v63 = vld [vmem:[%s3343_s15 + $0xc8] sm:$0xff] }
  0x84   : > { %v782_v0 = vld [vmem:[%s3343_s15 + $0xd8] sm:$0xff]  ;;  %v2636_v1 = vpack.c.bf16 %v777_v61, %v775_v60  ;;  %v835_v3 = vld [vmem:[%s3343_s15 + $0x280] sm:$0xff]  ;;  %v837_v4 = vld [vmem:[%s3343_s15 + $0x290] sm:$0xff] }
  0x85   : > { %v2638_v2 = vpack.c.bf16 %v782_v0, %v780_v63  ;;  %v840_v5 = vld [vmem:[%s3343_s15 + $0x2a8] sm:$0xff]  ;;  %v842_v6 = vld [vmem:[%s3343_s15 + $0x2b8] sm:$0xff]  ;;  %v2696_v7 = vpack.c.bf16 %v837_v4, %v835_v3  ;;  %v779_v8 = vld [vmem:[%s3343_s15 + $0xc0] sm:$0xff] }
  0x86   : > { %2685 = vmatpush1.bf16.xpose.msra.mxu1 %v2684_v34  ;;  %v781_v9 = vld [vmem:[%s3343_s15 + $0xd0] sm:$0xff]  ;;  %v2698_v10 = vpack.c.bf16 %v842_v6, %v840_v5  ;;  %v784_v11 = vld [vmem:[%s3343_s15 + $0xe8] sm:$0xff]  ;;  %v786_v12 = vld [vmem:[%s3343_s15 + $0xf8] sm:$0xff] }
  0x87   : > { %2687 = vmatprep.subr.bf16.mxu1 %v2686_v37  ;;  %v2640_v13 = vpack.c.bf16 %v781_v9, %v779_v8  ;;  %v2642_v14 = vpack.c.bf16 %v786_v12, %v784_v11  ;;  %v839_v15 = vld [vmem:[%s3343_s15 + $0x2a0] sm:$0xff]  ;;  %v841_v16 = vld [vmem:[%s3343_s15 + $0x2b0] sm:$0xff]  ;;  %v844_v17 = vld [vmem:[%s3343_s15 + $0x2c8] sm:$0xff] }
  0x88   : > { %v846_v18 = vld [vmem:[%s3343_s15 + $0x2d8] sm:$0xff]  ;;  %v2700_v19 = vpack.c.bf16 %v841_v16, %v839_v15  ;;  %v783_v20 = vld [vmem:[%s3343_s15 + $0xe0] sm:$0xff]  ;;  %v785_v21 = vld [vmem:[%s3343_s15 + $0xf0] sm:$0xff] }
  0x89   : > { %2625 = vmatpush1.bf16.xpose.msra.mxu0 %v2624_v28  ;;  %v2702_v22 = vpack.c.bf16 %v846_v18, %v844_v17  ;;  %v788_v23 = vld [vmem:[%s3343_s15 + $0x108] sm:$0xff]  ;;  %v790_v24 = vld [vmem:[%s3343_s15 + $0x118] sm:$0xff]  ;;  %v2644_v25 = vpack.c.bf16 %v785_v21, %v783_v20  ;;  %v843_v27 = vld [vmem:[%s3343_s15 + $0x2c0] sm:$0xff] }
  0x8a   : > { %2627 = vmatprep.subr.bf16.mxu0 %v2626_v29  ;;  %v2646_v26 = vpack.c.bf16 %v790_v24, %v788_v23  ;;  %v845_v28 = vld [vmem:[%s3343_s15 + $0x2d0] sm:$0xff]  ;;  %v848_v29 = vld [vmem:[%s3343_s15 + $0x2e8] sm:$0xff]  ;;  %v850_v30 = vld [vmem:[%s3343_s15 + $0x2f8] sm:$0xff] }
  0x8b   : > { %v2704_v31 = vpack.c.bf16 %v845_v28, %v843_v27  ;;  %v787_v32 = vld [vmem:[%s3343_s15 + $0x100] sm:$0xff]  ;;  %v789_v33 = vld [vmem:[%s3343_s15 + $0x110] sm:$0xff]  ;;  %v2706_v34 = vpack.c.bf16 %v850_v30, %v848_v29  ;;  %v792_v35 = vld [vmem:[%s3343_s15 + $0x128] sm:$0xff] }
  0x8c   : > { %v794_v36 = vld [vmem:[%s3343_s15 + $0x138] sm:$0xff]  ;;  %v2648_v37 = vpack.c.bf16 %v789_v33, %v787_v32  ;;  %v847_v39 = vld [vmem:[%s3343_s15 + $0x2e0] sm:$0xff]  ;;  %v793_v43 = vld [vmem:[%s3343_s15 + $0x130] sm:$0xff] }
  0x8d   : > { %v2650_v38 = vpack.c.bf16 %v794_v36, %v792_v35  ;;  %v791_v42 = vld [vmem:[%s3343_s15 + $0x120] sm:$0xff]  ;;  %v796_v44 = vld [vmem:[%s3343_s15 + $0x148] sm:$0xff]  ;;  %v798_v45 = vld [vmem:[%s3343_s15 + $0x158] sm:$0xff] }
  0x8e   : > { %2689 = vmatpush1.bf16.xpose.msra.mxu1 %v2688_v46  ;;  %v2652_v46 = vpack.c.bf16 %v793_v43, %v791_v42  ;;  %v2654_v47 = vpack.c.bf16 %v798_v45, %v796_v44  ;;  %v3425_v48 = vld [vmem:[%s3336_s2] sm:$0xff]  ;;  %v797_v50 = vld [vmem:[%s3343_s15 + $0x150] sm:$0xff]  ;;  %v3430_v51 = vld [vmem:[%s3336_s2 + $0x18] sm:$0xff] }
  0x8f   : > { %2691 = vmatprep.subr.bf16.mxu1 %v2690_v49  ;;  %v795_v49 = vld [vmem:[%s3343_s15 + $0x140] sm:$0xff]  ;;  %v802_v53 = vld [vmem:[%s3343_s15 + $0x178] sm:$0xff]  ;;  %v3437_v55 = vld [vmem:[%s3336_s2 + $0x10] sm:$0xff] }
  0x90   : > { %v3440_v57 = vld [vmem:[%s3336_s2 + $0x28] sm:$0xff]  ;;  %v3445_v58 = vld [vmem:[%s3336_s2 + $0x20] sm:$0xff]  ;;  %v801_v60 = vld [vmem:[%s3343_s15 + $0x170] sm:$0xff] }
  0x91   : > { %2629 = vmatpush1.bf16.xpose.msra.mxu0 %v2628_v40  ;;  %v849_v40 = vld [vmem:[%s3343_s15 + $0x2f0] sm:$0xff]  ;;  %v3450_v61 = vld [vmem:[%s3336_s2 + $0x38] sm:$0xff]  ;;  %v3460_v3 = vld [vmem:[%s3336_s2 + $0x48] sm:$0xff] }
  0x92   : > { %2631 = vmatprep.subr.bf16.mxu0 %v2630_v41  ;;  %v2708_v41 = vpack.c.bf16 %v849_v40, %v847_v39  ;;  %v806_v63 = vld [vmem:[%s3343_s15 + $0x198] sm:$0xff]  ;;  %v3465_v4 = vld [vmem:[%s3336_s2 + $0x40] sm:$0xff]  ;;  %v805_v6 = vld [vmem:[%s3343_s15 + $0x190] sm:$0xff] }
  0x93   : > { %v803_v5 = vld [vmem:[%s3343_s15 + $0x180] sm:$0xff]  ;;  %v808_v8 = vld [vmem:[%s3343_s15 + $0x1a8] sm:$0xff]  ;;  %v810_v9 = vld [vmem:[%s3343_s15 + $0x1b8] sm:$0xff] }
  0x94   : > { %v3477_v11 = vld [vmem:[%s3336_s2 + $0x50] sm:$0xff]  ;;  %v2666_v12 = vpack.c.bf16 %v810_v9, %v808_v8  ;;  %v807_v15 = vld [vmem:[%s3343_s15 + $0x1a0] sm:$0xff]  ;;  %v3490_v17 = vld [vmem:[%s3336_s2 + $0x78] sm:$0xff] }
  0x95   : > { %v809_v16 = vld [vmem:[%s3343_s15 + $0x1b0] sm:$0xff]  ;;  %v812_v18 = vld [vmem:[%s3343_s15 + $0x1c8] sm:$0xff]  ;;  %v3505_v24 = vld [vmem:[%s3336_s2 + $0x80] sm:$0xff] }
  0x96   : > { %2693 = vmatpush1.bf16.xpose.msra.mxu1 %v2692_v59  ;;  %v799_v59 = vld [vmem:[%s3343_s15 + $0x160] sm:$0xff]  ;;  %v2668_v20 = vpack.c.bf16 %v809_v16, %v807_v15  ;;  %v3497_v21 = vld [vmem:[%s3336_s2 + $0x70] sm:$0xff]  ;;  %v3500_v23 = vld [vmem:[%s3336_s2 + $0x88] sm:$0xff] }
  0x97   : > { %2695 = vmatprep.subr.bf16.mxu1 %v2694_v62  ;;  %v804_v62 = vld [vmem:[%s3343_s15 + $0x188] sm:$0xff]  ;;  %v2660_v0 = vpack.c.bf16 %v801_v60, %v799_v59  ;;  %v3510_v27 = vld [vmem:[%s3336_s2 + $0x98] sm:$0xff]  ;;  %v815_v35 = vld [vmem:[%s3343_s15 + $0x1e0] sm:$0xff] }
  0x98   : > { %v816_v28 = vld [vmem:[%s3343_s15 + $0x1e8] sm:$0xff]  ;;  %v818_v29 = vld [vmem:[%s3343_s15 + $0x1f8] sm:$0xff]  ;;  %v817_v36 = vld [vmem:[%s3343_s15 + $0x1f0] sm:$0xff] }
  0x99   : > { %2633 = vmatpush1.bf16.xpose.msra.mxu0 %v2632_v52  ;;  %v800_v52 = vld [vmem:[%s3343_s15 + $0x168] sm:$0xff]  ;;  %v2674_v32 = vpack.c.bf16 %v818_v29, %v816_v28  ;;  %v3535_v39 = vld [vmem:[%s3336_s2 + $0xb0] sm:$0xff]  ;;  %v3546_v42 = vld [vmem:[%s3336_s2 + $0xd8] sm:$0xff] }
  0x9a   : > { %2635 = vmatprep.subr.bf16.mxu0 %v2634_v54  ;;  %v2656_v54 = vpack.c.bf16 %v797_v50, %v795_v49  ;;  %v2658_v56 = vpack.c.bf16 %v802_v53, %v800_v52  ;;  %v3520_v33 = vld [vmem:[%s3336_s2 + $0xa8] sm:$0xff]  ;;  %v3551_v43 = vld [vmem:[%s3336_s2 + $0xd0] sm:$0xff]  ;;  %v3561_v45 = vld [vmem:[%s3336_s2 + $0xe0] sm:$0xff] }
  0x9b   : > { %v3538_v40 = vld [vmem:[%s3336_s2 + $0xc8] sm:$0xff]  ;;  %v3581_v49 = vld [vmem:[%s3336_s2 + $0x100] sm:$0xff]  ;;  %v3584_v50 = vld [vmem:[%s3336_s2 + $0x118] sm:$0xff] }
  0x9c   : > { %v3554_v44 = vld [vmem:[%s3336_s2 + $0xe8] sm:$0xff]  ;;  %v3601_v53 = vld [vmem:[%s3336_s2 + $0x120] sm:$0xff]  ;;  %v3631_v59 = vld [vmem:[%s3336_s2 + $0x150] sm:$0xff] }
  0x9d   : > { %v3594_v52 = vld [vmem:[%s3336_s2 + $0x128] sm:$0xff]  ;;  %v3701_v9 = vld [vmem:[%s3336_s2 + $0x1c0] sm:$0xff]  ;;  %v3731_v15 = vld [vmem:[%s3336_s2 + $0x1f0] sm:$0xff] }
  0x9e   : > { %2697 = vmatpush1.bf16.xpose.msra.mxu1 %v2696_v7  ;;  %v3470_v7 = vld [vmem:[%s3336_s2 + $0x58] sm:$0xff]  ;;  %v3634_v60 = vld [vmem:[%s3336_s2 + $0x168] sm:$0xff]  ;;  %v3801_v29 = vld [vmem:[%s3336_s2 + $0x260] sm:$0xff] }
  0x9f   : > { %2699 = vmatprep.subr.bf16.mxu1 %v2698_v10  ;;  %v2664_v10 = vpack.c.bf16 %v805_v6, %v803_v5  ;;  %v3681_v5 = vld [vmem:[%s3336_s2 + $0x1a0] sm:$0xff]  ;;  %v3684_v6 = vld [vmem:[%s3336_s2 + $0x1b8] sm:$0xff]  ;;  %v3694_v8 = vld [vmem:[%s3336_s2 + $0x1c8] sm:$0xff] }
  0xa0   : > { %v3734_v16 = vld [vmem:[%s3336_s2 + $0x208] sm:$0xff] }
  0xa1   : > { %2637 = vmatpush1.bf16.xpose.msra.mxu0 %v2636_v1  ;;  %v3457_v1 = vld [vmem:[%s3336_s2 + $0x30] sm:$0xff]  ;;  %v3794_v28 = vld [vmem:[%s3336_s2 + $0x268] sm:$0xff] }
  0xa2   : > { %2639 = vmatprep.subr.bf16.mxu0 %v2638_v2  ;;  %v2662_v2 = vpack.c.bf16 %v806_v63, %v804_v62  ;;  %v3644_v62 = vld [vmem:[%s3336_s2 + $0x178] sm:$0xff]  ;;  %v3651_v63 = vld [vmem:[%s3336_s2 + $0x170] sm:$0xff] }
  0xa6   : > { %2701 = vmatpush1.bf16.xpose.msra.mxu1 %v2700_v19  ;;  %v814_v19 = vld [vmem:[%s3343_s15 + $0x1d8] sm:$0xff] }
  0xa7   : > { %2703 = vmatprep.subr.bf16.mxu1 %v2702_v22  ;;  %v2670_v22 = vpack.c.bf16 %v814_v19, %v812_v18  ;;  %v3744_v18 = vld [vmem:[%s3336_s2 + $0x218] sm:$0xff]  ;;  %v3751_v19 = vld [vmem:[%s3336_s2 + $0x210] sm:$0xff] }
  0xa9   : > { %2641 = vmatpush1.bf16.xpose.msra.mxu0 %v2640_v13  ;;  %v3480_v13 = vld [vmem:[%s3336_s2 + $0x68] sm:$0xff] }
  0xaa   : > { %2643 = vmatprep.subr.bf16.mxu0 %v2642_v14  ;;  %v3485_v14 = vld [vmem:[%s3336_s2 + $0x60] sm:$0xff] }
  0xae   : > { %2705 = vmatpush1.bf16.xpose.msra.mxu1 %v2704_v31  ;;  %v3517_v31 = vld [vmem:[%s3336_s2 + $0x90] sm:$0xff] }
  0xaf   : > { %2707 = vmatprep.subr.bf16.mxu1 %v2706_v34  ;;  %v3525_v34 = vld [vmem:[%s3336_s2 + $0xa0] sm:$0xff] }
  0xb1   : > { %2645 = vmatpush1.bf16.xpose.msra.mxu0 %v2644_v25  ;;  %v811_v25 = vld [vmem:[%s3343_s15 + $0x1c0] sm:$0xff] }
  0xb2   : > { %2647 = vmatprep.subr.bf16.mxu0 %v2646_v26  ;;  %v813_v26 = vld [vmem:[%s3343_s15 + $0x1d0] sm:$0xff]  ;;  %s2914_s15 = sshll.u32 %s3066_s5, 4  ;;  %s2915_s15 = int_to_ptr.vmem [resolvable:$false] %s2914_s15 }
  0xb3   : > { %v2672_v30 = vpack.c.bf16 %v813_v26, %v811_v25  ;;  %v3781_v25 = vld [vmem:[%s3336_s2 + $0x240] sm:$0xff]  ;;  %v3784_v26 = vld [vmem:[%s3336_s2 + $0x258] sm:$0xff]  ;;  %s2916_s7 = scalar_lea.vmem %s2915_s15, 49152  ;;  %p2917_p2 = scmp.lt.s32.totalorder %s4284_s27, %s2915_s15 }
  0xb4   : > { %p2918_p10 = scmp.lt.s32.totalorder %s2916_s7, %s2910_s19 }
  0xb6   : > { %2709 = vmatpush1.bf16.xpose.msra.mxu1 %v2708_v41  ;;  %v3543_v41 = vld [vmem:[%s3336_s2 + $0xc0] sm:$0xff]  ;;  %p2919_p8 = por %p2918_p10, %p2917_p2 }
  0xb8   : > { %p2920_p5 = pnand %p2919_p8, %p2913_p11 }
  0xb9   : > { %2649 = vmatpush1.bf16.xpose.msra.mxu0 %v2648_v37  ;;  %v3530_v37 = vld [vmem:[%s3336_s2 + $0xb8] sm:$0xff] }
  0xba   : > { %2651 = vmatprep.subr.bf16.mxu0 %v2650_v38  ;;  %v2676_v38 = vpack.c.bf16 %v817_v36, %v815_v35  ;;  %v3831_v35 = vld [vmem:[%s3336_s2 + $0x290] sm:$0xff]  ;;  %v3834_v36 = vld [vmem:[%s3336_s2 + $0x2a8] sm:$0xff] }
  0xbd   : > { %1365 = vmatmul.mubr.f32.vlgmr.msra.gmra.mrb[0].mxu1 %v3425_v48 }
  0xbe   : > { %1369 = vmatprep.mubr.f32.mxu1 %v3430_v51 }
  0xc1   : > { %2653 = vmatpush1.bf16.xpose.msra.mxu0 %v2652_v46  ;;  %1370 = vmatmul.mubr.f32.gmra.mrb[2].mxu1 %v3437_v55  ;;  %v3564_v46 = vld [vmem:[%s3336_s2 + $0xf8] sm:$0xff] }
  0xc2   : > { %2655 = vmatprep.subr.bf16.mxu0 %v2654_v47  ;;  %1374 = vmatprep.mubr.f32.mxu1 %v3440_v57  ;;  %v3571_v47 = vld [vmem:[%s3336_s2 + $0xf0] sm:$0xff] }
  0xc5   : > { %1375 = vmatmul.mubr.f32.gmra.mrb[4].mxu1 %v3445_v58 }
  0xc6   : > { %1379 = vmatprep.mubr.f32.mxu1 %v3450_v61 }
  0xc9   : > { %2657 = vmatpush1.bf16.xpose.msra.mxu0 %v2656_v54  ;;  %1380 = vmatmul.mubr.f32.gmra.mrb[6].mxu1 %v3457_v1  ;;  %v3604_v54 = vld [vmem:[%s3336_s2 + $0x138] sm:$0xff] }
  0xca   : > { %2659 = vmatprep.subr.bf16.mxu0 %v2658_v56  ;;  %1384 = vmatprep.mubr.f32.mxu1 %v3460_v3  ;;  %v3614_v56 = vld [vmem:[%s3336_s2 + $0x148] sm:$0xff] }
  0xcd   : > { %1385 = vmatmul.mubr.f32.gmra.mrb[8].mxu1 %v3465_v4 }
  0xce   : > { %1389 = vmatprep.mubr.f32.mxu1 %v3470_v7 }
  0xd1   : > { %2661 = vmatpush1.bf16.xpose.msra.mxu0 %v2660_v0  ;;  %1390 = vmatmul.mubr.f32.gmra.mrb[10].mxu1 %v3477_v11  ;;  %v3654_v0 = vld [vmem:[%s3336_s2 + $0x188] sm:$0xff] }
  0xd2   : > { %2663 = vmatprep.subr.bf16.mxu0 %v2662_v2  ;;  %1394 = vmatprep.mubr.f32.mxu1 %v3480_v13  ;;  %v3664_v2 = vld [vmem:[%s3336_s2 + $0x198] sm:$0xff] }
  0xd5   : > { %1395 = vmatmul.mubr.f32.gmra.mrb[12].mxu1 %v3485_v14 }
  0xd6   : > { %1399 = vmatprep.mubr.f32.mxu1 %v3490_v17 }
  0xd9   : > { %2665 = vmatpush1.bf16.xpose.msra.mxu0 %v2664_v10  ;;  %1400 = vmatmul.mubr.f32.gmra.mrb[14].mxu1 %v3497_v21  ;;  %v3704_v10 = vld [vmem:[%s3336_s2 + $0x1d8] sm:$0xff] }
  0xda   : > { %2667 = vmatprep.subr.bf16.mxu0 %v2666_v12  ;;  %1404 = vmatprep.mubr.f32.mxu1 %v3500_v23  ;;  %v3714_v12 = vld [vmem:[%s3336_s2 + $0x1e8] sm:$0xff] }
  0xdd   : > { %1405 = vmatmul.mubr.f32.gmra.mrb[16].mxu1 %v3505_v24 }
  0xde   : > { %1409 = vmatprep.mubr.f32.mxu1 %v3510_v27 }
  0xe1   : > { %2669 = vmatpush1.bf16.xpose.msra.mxu0 %v2668_v20  ;;  %1410 = vmatmul.mubr.f32.gmra.mrb[18].mxu1 %v3517_v31  ;;  %v3754_v20 = vld [vmem:[%s3336_s2 + $0x228] sm:$0xff] }
  0xe2   : > { %2671 = vmatprep.subr.bf16.mxu0 %v2670_v22  ;;  %1414 = vmatprep.mubr.f32.mxu1 %v3520_v33  ;;  %v3764_v22 = vld [vmem:[%s3336_s2 + $0x238] sm:$0xff] }
  0xe5   : > { %1415 = vmatmul.mubr.f32.gmra.mrb[20].mxu1 %v3525_v34 }
  0xe6   : > { %1419 = vmatprep.mubr.f32.mxu1 %v3530_v37 }
  0xe9   : > { %2673 = vmatpush1.bf16.xpose.msra.mxu0 %v2672_v30  ;;  %1420 = vmatmul.mubr.f32.gmra.mrb[22].mxu1 %v3535_v39  ;;  %v3804_v30 = vld [vmem:[%s3336_s2 + $0x278] sm:$0xff] }
  0xea   : > { %2675 = vmatprep.subr.bf16.mxu0 %v2674_v32  ;;  %1424 = vmatprep.mubr.f32.mxu1 %v3538_v40  ;;  %v3814_v32 = vld [vmem:[%s3336_s2 + $0x288] sm:$0xff] }
  0xed   : > { %1425 = vmatmul.mubr.f32.gmra.mrb[24].mxu1 %v3543_v41 }
  0xee   : > { %1429 = vmatprep.mubr.f32.mxu1 %v3546_v42 }
  0xf1   : > { %2677 = vmatpush1.bf16.xpose.msra.mxu0 %v2676_v38  ;;  %1430 = vmatmul.mubr.f32.gmra.mrb[26].mxu1 %v3551_v43  ;;  %v3844_v38 = vld [vmem:[%s3336_s2 + $0x2b8] sm:$0xff] }
  0xf2   : > { %1434 = vmatprep.mubr.f32.mxu1 %v3554_v44 }
  0xf5   : > { %1435 = vmatmul.mubr.f32.gmra.mrb[28].mxu1 %v3561_v45 }
  0xf6   : > { %1439 = vmatprep.mubr.f32.mxu1 %v3564_v46 }
  0xf8   : > { %916 = vmatmul.mubr.f32.vlgmr.msra.gmra.mrb[0].mxu0 %v3425_v48  ;;  %v3574_v48 = vld [vmem:[%s3336_s2 + $0x108] sm:$0xff] }
  0xf9   : > { %921 = vmatprep.mubr.f32.mxu0 %v3430_v51  ;;  %1440 = vmatmul.mubr.f32.gmra.mrb[30].mxu1 %v3571_v47  ;;  %v3591_v51 = vld [vmem:[%s3336_s2 + $0x110] sm:$0xff] }
  0xfa   : > { %1444 = vmatprep.mubr.f32.mxu1 %v3574_v48 }
  0xfc   : > { %922 = vmatmul.mubr.f32.gmra.mrb[2].mxu0 %v3437_v55  ;;  %v3611_v55 = vld [vmem:[%s3336_s2 + $0x130] sm:$0xff] }
  0xfd   : > { %927 = vmatprep.mubr.f32.mxu0 %v3440_v57  ;;  %1445 = vmatmul.mubr.f32.gmra.mrb[32].mxu1 %v3581_v49  ;;  %v3621_v57 = vld [vmem:[%s3336_s2 + $0x140] sm:$0xff] }
  0xfe   : > { %1449 = vmatprep.mubr.f32.mxu1 %v3584_v50 }
 0x100   : > { %928 = vmatmul.mubr.f32.gmra.mrb[4].mxu0 %v3445_v58  ;;  %v3624_v58 = vld [vmem:[%s3336_s2 + $0x158] sm:$0xff] }
 0x101   : > { %933 = vmatprep.mubr.f32.mxu0 %v3450_v61  ;;  %1450 = vmatmul.mubr.f32.gmra.mrb[34].mxu1 %v3591_v51  ;;  %v3641_v61 = vld [vmem:[%s3336_s2 + $0x160] sm:$0xff] }
 0x102   : > { %1454 = vmatprep.mubr.f32.mxu1 %v3594_v52 }
 0x104   : > { %934 = vmatmul.mubr.f32.gmra.mrb[6].mxu0 %v3457_v1  ;;  %v3661_v1 = vld [vmem:[%s3336_s2 + $0x180] sm:$0xff] }
 0x105   : > { %939 = vmatprep.mubr.f32.mxu0 %v3460_v3  ;;  %1455 = vmatmul.mubr.f32.gmra.mrb[36].mxu1 %v3601_v53  ;;  %v3671_v3 = vld [vmem:[%s3336_s2 + $0x190] sm:$0xff] }
 0x106   : > { %1459 = vmatprep.mubr.f32.mxu1 %v3604_v54 }
 0x108   : > { %940 = vmatmul.mubr.f32.gmra.mrb[8].mxu0 %v3465_v4  ;;  %v3674_v4 = vld [vmem:[%s3336_s2 + $0x1a8] sm:$0xff] }
 0x109   : > { %945 = vmatprep.mubr.f32.mxu0 %v3470_v7  ;;  %1460 = vmatmul.mubr.f32.gmra.mrb[38].mxu1 %v3611_v55  ;;  %v3691_v7 = vld [vmem:[%s3336_s2 + $0x1b0] sm:$0xff] }
 0x10a   : > { %1464 = vmatprep.mubr.f32.mxu1 %v3614_v56 }
 0x10c   : > { %946 = vmatmul.mubr.f32.gmra.mrb[10].mxu0 %v3477_v11  ;;  %v3711_v11 = vld [vmem:[%s3336_s2 + $0x1d0] sm:$0xff] }
 0x10d   : > { %951 = vmatprep.mubr.f32.mxu0 %v3480_v13  ;;  %1465 = vmatmul.mubr.f32.gmra.mrb[40].mxu1 %v3621_v57  ;;  %v3721_v13 = vld [vmem:[%s3336_s2 + $0x1e0] sm:$0xff] }
 0x10e   : > { %1469 = vmatprep.mubr.f32.mxu1 %v3624_v58 }
 0x110   : > { %952 = vmatmul.mubr.f32.gmra.mrb[12].mxu0 %v3485_v14  ;;  %v3724_v14 = vld [vmem:[%s3336_s2 + $0x1f8] sm:$0xff] }
 0x111   : > { %957 = vmatprep.mubr.f32.mxu0 %v3490_v17  ;;  %1470 = vmatmul.mubr.f32.gmra.mrb[42].mxu1 %v3631_v59  ;;  %v3741_v17 = vld [vmem:[%s3336_s2 + $0x200] sm:$0xff] }
 0x112   : > { %1474 = vmatprep.mubr.f32.mxu1 %v3634_v60 }
 0x114   : > { %958 = vmatmul.mubr.f32.gmra.mrb[14].mxu0 %v3497_v21  ;;  %v3761_v21 = vld [vmem:[%s3336_s2 + $0x220] sm:$0xff] }
 0x115   : > { %963 = vmatprep.mubr.f32.mxu0 %v3500_v23  ;;  %1475 = vmatmul.mubr.f32.gmra.mrb[44].mxu1 %v3641_v61  ;;  %v3771_v23 = vld [vmem:[%s3336_s2 + $0x230] sm:$0xff] }
 0x116   : > { %1479 = vmatprep.mubr.f32.mxu1 %v3644_v62 }
 0x118   : > { %964 = vmatmul.mubr.f32.gmra.mrb[16].mxu0 %v3505_v24  ;;  %v3774_v24 = vld [vmem:[%s3336_s2 + $0x248] sm:$0xff] }
 0x119   : > { %969 = vmatprep.mubr.f32.mxu0 %v3510_v27  ;;  %1480 = vmatmul.mubr.f32.gmra.mrb[46].mxu1 %v3651_v63  ;;  %v3791_v27 = vld [vmem:[%s3336_s2 + $0x250] sm:$0xff] }
 0x11a   : > { %1484 = vmatprep.mubr.f32.mxu1 %v3654_v0 }
 0x11c   : > { %970 = vmatmul.mubr.f32.gmra.mrb[18].mxu0 %v3517_v31  ;;  %v3811_v31 = vld [vmem:[%s3336_s2 + $0x270] sm:$0xff] }
 0x11d   : > { %975 = vmatprep.mubr.f32.mxu0 %v3520_v33  ;;  %1485 = vmatmul.mubr.f32.gmra.mrb[48].mxu1 %v3661_v1  ;;  %v3821_v33 = vld [vmem:[%s3336_s2 + $0x280] sm:$0xff] }
 0x11e   : > { %1489 = vmatprep.mubr.f32.mxu1 %v3664_v2 }
 0x120   : > { %976 = vmatmul.mubr.f32.gmra.mrb[20].mxu0 %v3525_v34  ;;  %v3824_v34 = vld [vmem:[%s3336_s2 + $0x298] sm:$0xff] }
 0x121   : > { %981 = vmatprep.mubr.f32.mxu0 %v3530_v37  ;;  %1490 = vmatmul.mubr.f32.gmra.mrb[50].mxu1 %v3671_v3  ;;  %v3841_v37 = vld [vmem:[%s3336_s2 + $0x2a0] sm:$0xff] }
 0x122   : > { %1494 = vmatprep.mubr.f32.mxu1 %v3674_v4 }
 0x124   : > { %982 = vmatmul.mubr.f32.gmra.mrb[22].mxu0 %v3535_v39  ;;  %v3851_v39 = vld [vmem:[%s3336_s2 + $0x2b0] sm:$0xff] }
 0x125   : > { %987 = vmatprep.mubr.f32.mxu0 %v3538_v40  ;;  %1495 = vmatmul.mubr.f32.gmra.mrb[52].mxu1 %v3681_v5  ;;  %v3854_v40 = vld [vmem:[%s3336_s2 + $0x2c8] sm:$0xff] }
 0x126   : > { %1499 = vmatprep.mubr.f32.mxu1 %v3684_v6 }
 0x128   : > { %988 = vmatmul.mubr.f32.gmra.mrb[24].mxu0 %v3543_v41  ;;  %v3861_v41 = vld [vmem:[%s3336_s2 + $0x2c0] sm:$0xff] }
 0x129   : > { %993 = vmatprep.mubr.f32.mxu0 %v3546_v42  ;;  %1500 = vmatmul.mubr.f32.gmra.mrb[54].mxu1 %v3691_v7  ;;  %v3864_v42 = vld [vmem:[%s3336_s2 + $0x2d8] sm:$0xff] }
 0x12a   : > { %1504 = vmatprep.mubr.f32.mxu1 %v3694_v8 }
 0x12c   : > { %994 = vmatmul.mubr.f32.gmra.mrb[26].mxu0 %v3551_v43  ;;  %v3871_v43 = vld [vmem:[%s3336_s2 + $0x2d0] sm:$0xff] }
 0x12d   : > { %999 = vmatprep.mubr.f32.mxu0 %v3554_v44  ;;  %1505 = vmatmul.mubr.f32.gmra.mrb[56].mxu1 %v3701_v9  ;;  %v3874_v44 = vld [vmem:[%s3336_s2 + $0x2e8] sm:$0xff] }
 0x12e   : > { %1509 = vmatprep.mubr.f32.mxu1 %v3704_v10 }
 0x130   : > { %1000 = vmatmul.mubr.f32.gmra.mrb[28].mxu0 %v3561_v45  ;;  %v3881_v45 = vld [vmem:[%s3336_s2 + $0x2e0] sm:$0xff] }
 0x131   : > { %1005 = vmatprep.mubr.f32.mxu0 %v3564_v46  ;;  %1510 = vmatmul.mubr.f32.gmra.mrb[58].mxu1 %v3711_v11  ;;  %v3884_v46 = vld [vmem:[%s3336_s2 + $0x2f8] sm:$0xff] }
 0x132   : > { %1514 = vmatprep.mubr.f32.mxu1 %v3714_v12 }
 0x134   : > { %1006 = vmatmul.mubr.f32.gmra.mrb[30].mxu0 %v3571_v47  ;;  %v3891_v47 = vld [vmem:[%s3336_s2 + $0x2f0] sm:$0xff] }
 0x135   : > { %1011 = vmatprep.mubr.f32.mxu0 %v3574_v48  ;;  %1515 = vmatmul.mubr.f32.gmra.mrb[60].mxu1 %v3721_v13  ;;  %v3894_v48 = vld [vmem:[%s3336_s2 + $0x308] sm:$0xff] }
 0x136   : > { %1519 = vmatprep.mubr.f32.mxu1 %v3724_v14 }
 0x138   : > { %1012 = vmatmul.mubr.f32.gmra.mrb[32].mxu0 %v3581_v49  ;;  %v3901_v49 = vld [vmem:[%s3336_s2 + $0x300] sm:$0xff] }
 0x139   : > { %1017 = vmatprep.mubr.f32.mxu0 %v3584_v50  ;;  %1520 = vmatmul.mubr.f32.gmra.mrb[62].mxu1 %v3731_v15  ;;  %v3904_v50 = vld [vmem:[%s3336_s2 + $0x318] sm:$0xff] }
 0x13a   : > { %1524 = vmatprep.mubr.f32.mxu1 %v3734_v16 }
 0x13c   : > { %1018 = vmatmul.mubr.f32.gmra.mrb[34].mxu0 %v3591_v51  ;;  %v3911_v51 = vld [vmem:[%s3336_s2 + $0x310] sm:$0xff] }
 0x13d   : > { %1023 = vmatprep.mubr.f32.mxu0 %v3594_v52  ;;  %1525 = vmatmul.mubr.f32.gmra.mrb[64].mxu1 %v3741_v17  ;;  %v3914_v52 = vld [vmem:[%s3336_s2 + $0x328] sm:$0xff] }
 0x13e   : > { %1529 = vmatprep.mubr.f32.mxu1 %v3744_v18 }
 0x140   : > { %1024 = vmatmul.mubr.f32.gmra.mrb[36].mxu0 %v3601_v53  ;;  %v3921_v53 = vld [vmem:[%s3336_s2 + $0x320] sm:$0xff] }
 0x141   : > { %1029 = vmatprep.mubr.f32.mxu0 %v3604_v54  ;;  %1530 = vmatmul.mubr.f32.gmra.mrb[66].mxu1 %v3751_v19  ;;  %v3924_v54 = vld [vmem:[%s3336_s2 + $0x338] sm:$0xff] }
 0x142   : > { %1534 = vmatprep.mubr.f32.mxu1 %v3754_v20 }
 0x144   : > { %1030 = vmatmul.mubr.f32.gmra.mrb[38].mxu0 %v3611_v55  ;;  %v3931_v55 = vld [vmem:[%s3336_s2 + $0x330] sm:$0xff] }
 0x145   : > { %1035 = vmatprep.mubr.f32.mxu0 %v3614_v56  ;;  %1535 = vmatmul.mubr.f32.gmra.mrb[68].mxu1 %v3761_v21  ;;  %v3934_v56 = vld [vmem:[%s3336_s2 + $0x348] sm:$0xff] }
 0x146   : > { %1539 = vmatprep.mubr.f32.mxu1 %v3764_v22 }
 0x148   : > { %1036 = vmatmul.mubr.f32.gmra.mrb[40].mxu0 %v3621_v57  ;;  %v3942_v57 = vld [vmem:[%s3336_s2 + $0x340] sm:$0xff] }
 0x149   : > { %1041 = vmatprep.mubr.f32.mxu0 %v3624_v58  ;;  %1540 = vmatmul.mubr.f32.gmra.mrb[70].mxu1 %v3771_v23  ;;  %v3947_v58 = vld [vmem:[%s3336_s2 + $0x358] sm:$0xff] }
 0x14a   : > { %1544 = vmatprep.mubr.f32.mxu1 %v3774_v24 }
 0x14c   : > { %1042 = vmatmul.mubr.f32.gmra.mrb[42].mxu0 %v3631_v59  ;;  %v3954_v59 = vld [vmem:[%s3336_s2 + $0x350] sm:$0xff] }
 0x14d   : > { %1047 = vmatprep.mubr.f32.mxu0 %v3634_v60  ;;  %1545 = vmatmul.mubr.f32.gmra.mrb[72].mxu1 %v3781_v25  ;;  %v3957_v60 = vld [vmem:[%s3336_s2 + $0x368] sm:$0xff] }
 0x14e   : > { %1549 = vmatprep.mubr.f32.mxu1 %v3784_v26 }
 0x150   : > { %1048 = vmatmul.mubr.f32.gmra.mrb[44].mxu0 %v3641_v61 }
 0x151   : > { %1053 = vmatprep.mubr.f32.mxu0 %v3644_v62  ;;  %1550 = vmatmul.mubr.f32.gmra.mrb[74].mxu1 %v3791_v27 }
 0x152   : > { %1554 = vmatprep.mubr.f32.mxu1 %v3794_v28 }
 0x154   : > { %1054 = vmatmul.mubr.f32.gmra.mrb[46].mxu0 %v3651_v63  ;;  %v3967_v63 = vld [vmem:[%s3336_s2 + $0x360] sm:$0xff] }
 0x155   : > { %1059 = vmatprep.mubr.f32.mxu0 %v3654_v0  ;;  %1555 = vmatmul.mubr.f32.gmra.mrb[76].mxu1 %v3801_v29  ;;  %v3970_v0 = vld [vmem:[%s3336_s2 + $0x378] sm:$0xff] }
 0x156   : > { %1559 = vmatprep.mubr.f32.mxu1 %v3804_v30 }
 0x158   : > { %1060 = vmatmul.mubr.f32.gmra.mrb[48].mxu0 %v3661_v1 }
 0x159   : > { %1065 = vmatprep.mubr.f32.mxu0 %v3664_v2  ;;  %1560 = vmatmul.mubr.f32.gmra.mrb[78].mxu1 %v3811_v31 }
 0x15a   : > { %1564 = vmatprep.mubr.f32.mxu1 %v3814_v32 }
 0x15c   : > { %1066 = vmatmul.mubr.f32.gmra.mrb[50].mxu0 %v3671_v3  ;;  %v3978_v3 = vld [vmem:[%s3336_s2 + $0x370] sm:$0xff] }
 0x15d   : > { %1071 = vmatprep.mubr.f32.mxu0 %v3674_v4  ;;  %1565 = vmatmul.mubr.f32.gmra.mrb[80].mxu1 %v3821_v33  ;;  %v3981_v4 = vld [vmem:[%s3336_s2 + $0x388] sm:$0xff] }
 0x15e   : > { %1569 = vmatprep.mubr.f32.mxu1 %v3824_v34 }
 0x160   : > { %1072 = vmatmul.mubr.f32.gmra.mrb[52].mxu0 %v3681_v5 }
 0x161   : > { %1077 = vmatprep.mubr.f32.mxu0 %v3684_v6  ;;  %1570 = vmatmul.mubr.f32.gmra.mrb[82].mxu1 %v3831_v35 }
 0x162   : > { %1574 = vmatprep.mubr.f32.mxu1 %v3834_v36 }
 0x164   : > { %1078 = vmatmul.mubr.f32.gmra.mrb[54].mxu0 %v3691_v7  ;;  %v3989_v7 = vld [vmem:[%s3336_s2 + $0x380] sm:$0xff] }
 0x165   : > { %1083 = vmatprep.mubr.f32.mxu0 %v3694_v8  ;;  %1575 = vmatmul.mubr.f32.gmra.mrb[84].mxu1 %v3841_v37  ;;  %v3992_v8 = vld [vmem:[%s3336_s2 + $0x398] sm:$0xff] }
 0x166   : > { %1579 = vmatprep.mubr.f32.mxu1 %v3844_v38 }
 0x168   : > { %1084 = vmatmul.mubr.f32.gmra.mrb[56].mxu0 %v3701_v9 }
 0x169   : > { %1089 = vmatprep.mubr.f32.mxu0 %v3704_v10  ;;  %1580 = vmatmul.mubr.f32.gmra.mrb[86].mxu1 %v3851_v39 }
 0x16a   : > { %1584 = vmatprep.mubr.f32.mxu1 %v3854_v40 }
 0x16c   : > { %1090 = vmatmul.mubr.f32.gmra.mrb[58].mxu0 %v3711_v11  ;;  %v4000_v11 = vld [vmem:[%s3336_s2 + $0x390] sm:$0xff] }
 0x16d   : > { %1095 = vmatprep.mubr.f32.mxu0 %v3714_v12  ;;  %1585 = vmatmul.mubr.f32.gmra.mrb[88].mxu1 %v3861_v41  ;;  %v4003_v12 = vld [vmem:[%s3336_s2 + $0x3a8] sm:$0xff] }
 0x16e   : > { %1589 = vmatprep.mubr.f32.mxu1 %v3864_v42 }
 0x170   : > { %1096 = vmatmul.mubr.f32.gmra.mrb[60].mxu0 %v3721_v13 }
 0x171   : > { %1101 = vmatprep.mubr.f32.mxu0 %v3724_v14  ;;  %1590 = vmatmul.mubr.f32.gmra.mrb[90].mxu1 %v3871_v43 }
 0x172   : > { %1594 = vmatprep.mubr.f32.mxu1 %v3874_v44 }
 0x174   : > { %1102 = vmatmul.mubr.f32.gmra.mrb[62].mxu0 %v3731_v15  ;;  %v4011_v15 = vld [vmem:[%s3336_s2 + $0x3a0] sm:$0xff] }
 0x175   : > { %1107 = vmatprep.mubr.f32.mxu0 %v3734_v16  ;;  %1595 = vmatmul.mubr.f32.gmra.mrb[92].mxu1 %v3881_v45  ;;  %v4014_v16 = vld [vmem:[%s3336_s2 + $0x3b8] sm:$0xff] }
 0x176   : > { %1599 = vmatprep.mubr.f32.mxu1 %v3884_v46 }
 0x178   : > { %1108 = vmatmul.mubr.f32.gmra.mrb[64].mxu0 %v3741_v17 }
 0x179   : > { %1113 = vmatprep.mubr.f32.mxu0 %v3744_v18  ;;  %1600 = vmatmul.mubr.f32.gmra.mrb[94].mxu1 %v3891_v47 }
 0x17a   : > { %1604 = vmatprep.mubr.f32.mxu1 %v3894_v48 }
 0x17c   : > { %1114 = vmatmul.mubr.f32.gmra.mrb[66].mxu0 %v3751_v19  ;;  %v4022_v19 = vld [vmem:[%s3336_s2 + $0x3b0] sm:$0xff] }
 0x17d   : > { %1119 = vmatprep.mubr.f32.mxu0 %v3754_v20  ;;  %1605 = vmatmul.mubr.f32.gmra.mrb[96].mxu1 %v3901_v49  ;;  %v4025_v20 = vld [vmem:[%s3336_s2 + $0x3c8] sm:$0xff] }
 0x17e   : > { %1609 = vmatprep.mubr.f32.mxu1 %v3904_v50 }
 0x180   : > { %1120 = vmatmul.mubr.f32.gmra.mrb[68].mxu0 %v3761_v21 }
 0x181   : > { %1125 = vmatprep.mubr.f32.mxu0 %v3764_v22  ;;  %1610 = vmatmul.mubr.f32.gmra.mrb[98].mxu1 %v3911_v51 }
 0x182   : > { %1614 = vmatprep.mubr.f32.mxu1 %v3914_v52 }
 0x184   : > { %1126 = vmatmul.mubr.f32.gmra.mrb[70].mxu0 %v3771_v23  ;;  %v4033_v23 = vld [vmem:[%s3336_s2 + $0x3c0] sm:$0xff] }
 0x185   : > { %1131 = vmatprep.mubr.f32.mxu0 %v3774_v24  ;;  %1615 = vmatmul.mubr.f32.gmra.mrb[100].mxu1 %v3921_v53  ;;  %v4036_v24 = vld [vmem:[%s3336_s2 + $0x3d8] sm:$0xff] }
 0x186   : > { %1619 = vmatprep.mubr.f32.mxu1 %v3924_v54 }
 0x188   : > { %1132 = vmatmul.mubr.f32.gmra.mrb[72].mxu0 %v3781_v25 }
 0x189   : > { %1137 = vmatprep.mubr.f32.mxu0 %v3784_v26  ;;  %1620 = vmatmul.mubr.f32.gmra.mrb[102].mxu1 %v3931_v55 }
 0x18a   : > { %1624 = vmatprep.mubr.f32.mxu1 %v3934_v56 }
 0x18c   : > { %1138 = vmatmul.mubr.f32.gmra.mrb[74].mxu0 %v3791_v27  ;;  %v4044_v27 = vld [vmem:[%s3336_s2 + $0x3d0] sm:$0xff] }
 0x18d   : > { %1143 = vmatprep.mubr.f32.mxu0 %v3794_v28  ;;  %1625 = vmatmul.mubr.f32.gmra.mrb[104].mxu1 %v3942_v57  ;;  %v4047_v28 = vld [vmem:[%s3336_s2 + $0x3e8] sm:$0xff] }
 0x18e   : > { %1629 = vmatprep.mubr.f32.mxu1 %v3947_v58 }
 0x190   : > { %1144 = vmatmul.mubr.f32.gmra.mrb[76].mxu0 %v3801_v29  ;;  %v1366_v61 = vpop.f32.mrb[0].mxu1 }
 0x191   : > { %1149 = vmatprep.mubr.f32.mxu0 %v3804_v30  ;;  %2266 = vst [vmem:[%s3960_s12 + $0x10] sm:$0xff] %v1366_v61  ;;  %v1368_v62 = vpop.f32.mrb[1].mxu1  ;;  %1630 = vmatmul.mubr.f32.gmra.mrb[106].mxu1 %v3954_v59 }
 0x192   : > { %1634 = vmatprep.mubr.f32.mxu1 %v3957_v60 }
 0x194   : > { %1150 = vmatmul.mubr.f32.gmra.mrb[78].mxu0 %v3811_v31  ;;  %v1371_v1 = vpop.f32.mrb[2].mxu1  ;;  %v4055_v31 = vld [vmem:[%s3336_s2 + $0x3e0] sm:$0xff] }
 0x195   : > { %1155 = vmatprep.mubr.f32.mxu0 %v3814_v32  ;;  %2269 = vst [vmem:[%s3960_s12 + $0x28] sm:$0xff] %v1371_v1  ;;  %v1373_v2 = vpop.f32.mrb[3].mxu1  ;;  %1635 = vmatmul.mubr.f32.gmra.mrb[108].mxu1 %v3967_v63  ;;  %v4058_v32 = vld [vmem:[%s3336_s2 + $0x3f8] sm:$0xff] }
 0x196   : > { %1639 = vmatprep.mubr.f32.mxu1 %v3970_v0 }
 0x198   : > { %1156 = vmatmul.mubr.f32.gmra.mrb[80].mxu0 %v3821_v33  ;;  %v1376_v5 = vpop.f32.mrb[4].mxu1 }
 0x199   : > { %1161 = vmatprep.mubr.f32.mxu0 %v3824_v34  ;;  %2272 = vst [vmem:[%s3960_s12 + $0x40] sm:$0xff] %v1376_v5  ;;  %v1378_v6 = vpop.f32.mrb[5].mxu1  ;;  %1640 = vmatmul.mubr.f32.gmra.mrb[110].mxu1 %v3978_v3 }
 0x19a   : > { %1644 = vmatprep.mubr.f32.mxu1 %v3981_v4 }
 0x19c   : > { %1162 = vmatmul.mubr.f32.gmra.mrb[82].mxu0 %v3831_v35  ;;  %v1381_v9 = vpop.f32.mrb[6].mxu1  ;;  %v4066_v35 = vld [vmem:[%s3336_s2 + $0x3f0] sm:$0xff]  ;;  %s4282_s2 = scalar_lea.hbm %s4408_s25, %s2606_s26 }
 0x19d   : > { %1167 = vmatprep.mubr.f32.mxu0 %v3834_v36  ;;  %2275 = vst [vmem:[%s3960_s12 + $0x58] sm:$0xff] %v1381_v9  ;;  %v1383_v10 = vpop.f32.mrb[7].mxu1  ;;  %1645 = vmatmul.mubr.f32.gmra.mrb[112].mxu1 %v3989_v7 }
 0x19e   : > { %1649 = vmatprep.mubr.f32.mxu1 %v3992_v8 }
 0x1a0   : > { %1168 = vmatmul.mubr.f32.gmra.mrb[84].mxu0 %v3841_v37  ;;  %v1386_v13 = vpop.f32.mrb[8].mxu1 }
 0x1a1   : > { %1173 = vmatprep.mubr.f32.mxu0 %v3844_v38  ;;  %2278 = vst [vmem:[%s3960_s12 + $0x70] sm:$0xff] %v1386_v13  ;;  %v1388_v14 = vpop.f32.mrb[9].mxu1  ;;  %1650 = vmatmul.mubr.f32.gmra.mrb[114].mxu1 %v4000_v11 }
 0x1a2   : > { %1654 = vmatprep.mubr.f32.mxu1 %v4003_v12 }
 0x1a4   : > { %1174 = vmatmul.mubr.f32.gmra.mrb[86].mxu0 %v3851_v39  ;;  %v1391_v17 = vpop.f32.mrb[10].mxu1 }
 0x1a5   : > { %1179 = vmatprep.mubr.f32.mxu0 %v3854_v40  ;;  %2281 = vst [vmem:[%s3960_s12 + $0x88] sm:$0xff] %v1391_v17  ;;  %v1393_v18 = vpop.f32.mrb[11].mxu1  ;;  %1655 = vmatmul.mubr.f32.gmra.mrb[116].mxu1 %v4011_v15 }
 0x1a6   : > { %1659 = vmatprep.mubr.f32.mxu1 %v4014_v16 }
 0x1a8   : > { %1180 = vmatmul.mubr.f32.gmra.mrb[88].mxu0 %v3861_v41  ;;  %v1396_v21 = vpop.f32.mrb[12].mxu1 }
 0x1a9   : > { %1185 = vmatprep.mubr.f32.mxu0 %v3864_v42  ;;  %2284 = vst [vmem:[%s3960_s12 + $0xa0] sm:$0xff] %v1396_v21  ;;  %v1398_v22 = vpop.f32.mrb[13].mxu1  ;;  %1660 = vmatmul.mubr.f32.gmra.mrb[118].mxu1 %v4022_v19 }
 0x1aa   : > { %1664 = vmatprep.mubr.f32.mxu1 %v4025_v20 }
 0x1ac   : > { %1186 = vmatmul.mubr.f32.gmra.mrb[90].mxu0 %v3871_v43  ;;  %v1401_v25 = vpop.f32.mrb[14].mxu1 }
 0x1ad   : > { %1191 = vmatprep.mubr.f32.mxu0 %v3874_v44  ;;  %2287 = vst [vmem:[%s3960_s12 + $0xb8] sm:$0xff] %v1401_v25  ;;  %v1403_v26 = vpop.f32.mrb[15].mxu1  ;;  %1665 = vmatmul.mubr.f32.gmra.mrb[120].mxu1 %v4033_v23 }
 0x1ae   : > { %1669 = vmatprep.mubr.f32.mxu1 %v4036_v24 }
 0x1b0   : > { %1192 = vmatmul.mubr.f32.gmra.mrb[92].mxu0 %v3881_v45  ;;  %v1406_v29 = vpop.f32.mrb[16].mxu1 }
 0x1b1   : > { %1197 = vmatprep.mubr.f32.mxu0 %v3884_v46  ;;  %2290 = vst [vmem:[%s3960_s12 + $0xd0] sm:$0xff] %v1406_v29  ;;  %v1408_v30 = vpop.f32.mrb[17].mxu1  ;;  %1670 = vmatmul.mubr.f32.gmra.mrb[122].mxu1 %v4044_v27 }
 0x1b2   : > { %1674 = vmatprep.mubr.f32.mxu1 %v4047_v28 }
 0x1b4   : > { %1198 = vmatmul.mubr.f32.gmra.mrb[94].mxu0 %v3891_v47  ;;  %v1411_v33 = vpop.f32.mrb[18].mxu1 }
 0x1b5   : > { %1203 = vmatprep.mubr.f32.mxu0 %v3894_v48  ;;  %2293 = vst [vmem:[%s3960_s12 + $0xe8] sm:$0xff] %v1411_v33  ;;  %v1413_v34 = vpop.f32.mrb[19].mxu1  ;;  %1675 = vmatmul.mubr.f32.gmra.mrb[124].mxu1 %v4055_v31 }
 0x1b6   : > { %1679 = vmatprep.mubr.f32.mxu1 %v4058_v32 }
 0x1b8   : > { %1204 = vmatmul.mubr.f32.gmra.mrb[96].mxu0 %v3901_v49  ;;  %v1416_v36 = vpop.f32.mrb[20].mxu1 }
 0x1b9   : > { %1209 = vmatprep.mubr.f32.mxu0 %v3904_v50  ;;  %2296 = vst [vmem:[%s3960_s12 + $0x100] sm:$0xff] %v1416_v36  ;;  %v1418_v37 = vpop.f32.mrb[21].mxu1  ;;  %1680 = vmatmul.mubr.f32.gmra.mrb[126].mxu1 %v4066_v35 }
 0x1bc   : > { %1210 = vmatmul.mubr.f32.gmra.mrb[98].mxu0 %v3911_v51  ;;  %v1421_v38 = vpop.f32.mrb[22].mxu1 }
 0x1bd   : > { %1215 = vmatprep.mubr.f32.mxu0 %v3914_v52  ;;  %2299 = vst [vmem:[%s3960_s12 + $0x118] sm:$0xff] %v1421_v38  ;;  %v1423_v39 = vpop.f32.mrb[23].mxu1 }
 0x1c0   : > { %1216 = vmatmul.mubr.f32.gmra.mrb[100].mxu0 %v3921_v53  ;;  %v1426_v40 = vpop.f32.mrb[24].mxu1 }
 0x1c1   : > { %1221 = vmatprep.mubr.f32.mxu0 %v3924_v54  ;;  %2302 = vst [vmem:[%s3960_s12 + $0x130] sm:$0xff] %v1426_v40  ;;  %v1428_v41 = vpop.f32.mrb[25].mxu1 }
 0x1c4   : > { %1222 = vmatmul.mubr.f32.gmra.mrb[102].mxu0 %v3931_v55  ;;  %v1431_v43 = vpop.f32.mrb[26].mxu1 }
 0x1c5   : > { %1227 = vmatprep.mubr.f32.mxu0 %v3934_v56  ;;  %2305 = vst [vmem:[%s3960_s12 + $0x148] sm:$0xff] %v1431_v43  ;;  %v1433_v45 = vpop.f32.mrb[27].mxu1 }
 0x1c8   : > { %1228 = vmatmul.mubr.f32.gmra.mrb[104].mxu0 %v3942_v57  ;;  %v1436_v47 = vpop.f32.mrb[28].mxu1 }
 0x1c9   : > { %1233 = vmatprep.mubr.f32.mxu0 %v3947_v58  ;;  %2308 = vst [vmem:[%s3960_s12 + $0x160] sm:$0xff] %v1436_v47  ;;  %v1438_v49 = vpop.f32.mrb[29].mxu1 }
 0x1cb   : > { %v917_v42 = vpop.f32.mrb[0].mxu0 }
 0x1cc   : > { %2264 = vst [vmem:[%s3960_s12] sm:$0xff] %v917_v42  ;;  %v919_v44 = vpop.f32.mrb[1].mxu0  ;;  %1234 = vmatmul.mubr.f32.gmra.mrb[106].mxu0 %v3954_v59  ;;  %v1441_v51 = vpop.f32.mrb[30].mxu1 }
 0x1cd   : > { %2265 = vst [vmem:[%s3960_s12 + $0x8] sm:$0xff] %v919_v44  ;;  %1239 = vmatprep.mubr.f32.mxu0 %v3957_v60  ;;  %2311 = vst [vmem:[%s3960_s12 + $0x178] sm:$0xff] %v1441_v51  ;;  %v1443_v53 = vpop.f32.mrb[31].mxu1 }
 0x1cf   : > { %v923_v46 = vpop.f32.mrb[2].mxu0 }
 0x1d0   : > { %2267 = vst [vmem:[%s3960_s12 + $0x18] sm:$0xff] %v923_v46  ;;  %v925_v48 = vpop.f32.mrb[3].mxu0  ;;  %1240 = vmatmul.mubr.f32.gmra.mrb[108].mxu0 %v3967_v63  ;;  %v1446_v55 = vpop.f32.mrb[32].mxu1 }
 0x1d1   : > { %2268 = vst [vmem:[%s3960_s12 + $0x20] sm:$0xff] %v925_v48  ;;  %1245 = vmatprep.mubr.f32.mxu0 %v3970_v0  ;;  %2314 = vst [vmem:[%s3960_s12 + $0x190] sm:$0xff] %v1446_v55  ;;  %v1448_v57 = vpop.f32.mrb[33].mxu1 }
 0x1d3   : > { %v929_v50 = vpop.f32.mrb[4].mxu0 }
 0x1d4   : > { %2270 = vst [vmem:[%s3960_s12 + $0x30] sm:$0xff] %v929_v50  ;;  %v931_v52 = vpop.f32.mrb[5].mxu0  ;;  %1246 = vmatmul.mubr.f32.gmra.mrb[110].mxu0 %v3978_v3  ;;  %v1451_v59 = vpop.f32.mrb[34].mxu1 }
 0x1d5   : > { %2271 = vst [vmem:[%s3960_s12 + $0x38] sm:$0xff] %v931_v52  ;;  %1251 = vmatprep.mubr.f32.mxu0 %v3981_v4  ;;  %2317 = vst [vmem:[%s3960_s12 + $0x1a8] sm:$0xff] %v1451_v59  ;;  %v1453_v61 = vpop.f32.mrb[35].mxu1 }
 0x1d7   : > { %v935_v54 = vpop.f32.mrb[6].mxu0 }
 0x1d8   : > { %2273 = vst [vmem:[%s3960_s12 + $0x48] sm:$0xff] %v935_v54  ;;  %v937_v56 = vpop.f32.mrb[7].mxu0  ;;  %1252 = vmatmul.mubr.f32.gmra.mrb[112].mxu0 %v3989_v7  ;;  %v1456_v63 = vpop.f32.mrb[36].mxu1 }
 0x1d9   : > { %2274 = vst [vmem:[%s3960_s12 + $0x50] sm:$0xff] %v937_v56  ;;  %1257 = vmatprep.mubr.f32.mxu0 %v3992_v8  ;;  %2320 = vst [vmem:[%s3960_s12 + $0x1c0] sm:$0xff] %v1456_v63  ;;  %v1458_v1 = vpop.f32.mrb[37].mxu1 }
 0x1db   : > { %v941_v58 = vpop.f32.mrb[8].mxu0 }
 0x1dc   : > { %2276 = vst [vmem:[%s3960_s12 + $0x60] sm:$0xff] %v941_v58  ;;  %v943_v60 = vpop.f32.mrb[9].mxu0  ;;  %1258 = vmatmul.mubr.f32.gmra.mrb[114].mxu0 %v4000_v11  ;;  %v1461_v3 = vpop.f32.mrb[38].mxu1 }
 0x1dd   : > { %2277 = vst [vmem:[%s3960_s12 + $0x68] sm:$0xff] %v943_v60  ;;  %1263 = vmatprep.mubr.f32.mxu0 %v4003_v12  ;;  %2323 = vst [vmem:[%s3960_s12 + $0x1d8] sm:$0xff] %v1461_v3  ;;  %v1463_v5 = vpop.f32.mrb[39].mxu1 }
 0x1df   : > { %v947_v62 = vpop.f32.mrb[10].mxu0 }
 0x1e0   : > { %2279 = vst [vmem:[%s3960_s12 + $0x78] sm:$0xff] %v947_v62  ;;  %v949_v0 = vpop.f32.mrb[11].mxu0  ;;  %1264 = vmatmul.mubr.f32.gmra.mrb[116].mxu0 %v4011_v15  ;;  %v1466_v7 = vpop.f32.mrb[40].mxu1 }
 0x1e1   : > { %2280 = vst [vmem:[%s3960_s12 + $0x80] sm:$0xff] %v949_v0  ;;  %1269 = vmatprep.mubr.f32.mxu0 %v4014_v16  ;;  %2326 = vst [vmem:[%s3960_s12 + $0x1f0] sm:$0xff] %v1466_v7  ;;  %v1468_v9 = vpop.f32.mrb[41].mxu1 }
 0x1e3   : > { %v953_v2 = vpop.f32.mrb[12].mxu0 }
 0x1e4   : > { %2282 = vst [vmem:[%s3960_s12 + $0x90] sm:$0xff] %v953_v2  ;;  %v955_v4 = vpop.f32.mrb[13].mxu0  ;;  %1270 = vmatmul.mubr.f32.gmra.mrb[118].mxu0 %v4022_v19  ;;  %v1471_v11 = vpop.f32.mrb[42].mxu1 }
 0x1e5   : > { %2283 = vst [vmem:[%s3960_s12 + $0x98] sm:$0xff] %v955_v4  ;;  %1275 = vmatprep.mubr.f32.mxu0 %v4025_v20  ;;  %2329 = vst [vmem:[%s3960_s12 + $0x208] sm:$0xff] %v1471_v11  ;;  %v1473_v13 = vpop.f32.mrb[43].mxu1 }
 0x1e7   : > { %v959_v6 = vpop.f32.mrb[14].mxu0 }
 0x1e8   : > { %2285 = vst [vmem:[%s3960_s12 + $0xa8] sm:$0xff] %v959_v6  ;;  %v961_v8 = vpop.f32.mrb[15].mxu0  ;;  %1276 = vmatmul.mubr.f32.gmra.mrb[120].mxu0 %v4033_v23  ;;  %v1476_v15 = vpop.f32.mrb[44].mxu1 }
 0x1e9   : > { %2286 = vst [vmem:[%s3960_s12 + $0xb0] sm:$0xff] %v961_v8  ;;  %1281 = vmatprep.mubr.f32.mxu0 %v4036_v24  ;;  %2332 = vst [vmem:[%s3960_s12 + $0x220] sm:$0xff] %v1476_v15  ;;  %v1478_v17 = vpop.f32.mrb[45].mxu1 }
 0x1eb   : > { %v965_v10 = vpop.f32.mrb[16].mxu0 }
 0x1ec   : > { %2288 = vst [vmem:[%s3960_s12 + $0xc0] sm:$0xff] %v965_v10  ;;  %v967_v12 = vpop.f32.mrb[17].mxu0  ;;  %1282 = vmatmul.mubr.f32.gmra.mrb[122].mxu0 %v4044_v27  ;;  %v1481_v19 = vpop.f32.mrb[46].mxu1 }
 0x1ed   : > { %2289 = vst [vmem:[%s3960_s12 + $0xc8] sm:$0xff] %v967_v12  ;;  %1287 = vmatprep.mubr.f32.mxu0 %v4047_v28  ;;  %2335 = vst [vmem:[%s3960_s12 + $0x238] sm:$0xff] %v1481_v19  ;;  %v1483_v21 = vpop.f32.mrb[47].mxu1 }
 0x1ef   : > { %v971_v14 = vpop.f32.mrb[18].mxu0 }
 0x1f0   : > { %2291 = vst [vmem:[%s3960_s12 + $0xd8] sm:$0xff] %v971_v14  ;;  %v973_v16 = vpop.f32.mrb[19].mxu0  ;;  %1288 = vmatmul.mubr.f32.gmra.mrb[124].mxu0 %v4055_v31  ;;  %v1486_v23 = vpop.f32.mrb[48].mxu1 }
 0x1f1   : > { %2292 = vst [vmem:[%s3960_s12 + $0xe0] sm:$0xff] %v973_v16  ;;  %1293 = vmatprep.mubr.f32.mxu0 %v4058_v32  ;;  %2338 = vst [vmem:[%s3960_s12 + $0x250] sm:$0xff] %v1486_v23  ;;  %v1488_v25 = vpop.f32.mrb[49].mxu1 }
 0x1f3   : > { %v977_v18 = vpop.f32.mrb[20].mxu0 }
 0x1f4   : > { %2294 = vst [vmem:[%s3960_s12 + $0xf0] sm:$0xff] %v977_v18  ;;  %v979_v20 = vpop.f32.mrb[21].mxu0  ;;  %1294 = vmatmul.mubr.f32.gmra.mrb[126].mxu0 %v4066_v35  ;;  %v1491_v27 = vpop.f32.mrb[50].mxu1 }
 0x1f5   : > { %2295 = vst [vmem:[%s3960_s12 + $0xf8] sm:$0xff] %v979_v20  ;;  %2341 = vst [vmem:[%s3960_s12 + $0x268] sm:$0xff] %v1491_v27  ;;  %v1493_v29 = vpop.f32.mrb[51].mxu1 }
 0x1f7   : > { %v983_v22 = vpop.f32.mrb[22].mxu0 }
 0x1f8   : > { %2297 = vst [vmem:[%s3960_s12 + $0x108] sm:$0xff] %v983_v22  ;;  %v985_v24 = vpop.f32.mrb[23].mxu0  ;;  %v1496_v31 = vpop.f32.mrb[52].mxu1 }
 0x1f9   : > { %2298 = vst [vmem:[%s3960_s12 + $0x110] sm:$0xff] %v985_v24  ;;  %2344 = vst [vmem:[%s3960_s12 + $0x280] sm:$0xff] %v1496_v31  ;;  %v1498_v33 = vpop.f32.mrb[53].mxu1 }
 0x1fb   : > { %v989_v26 = vpop.f32.mrb[24].mxu0 }
 0x1fc   : > { %2300 = vst [vmem:[%s3960_s12 + $0x120] sm:$0xff] %v989_v26  ;;  %v991_v28 = vpop.f32.mrb[25].mxu0  ;;  %v1501_v35 = vpop.f32.mrb[54].mxu1 }
 0x1fd   : > { %2301 = vst [vmem:[%s3960_s12 + $0x128] sm:$0xff] %v991_v28  ;;  %2347 = vst [vmem:[%s3960_s12 + $0x298] sm:$0xff] %v1501_v35  ;;  %v1503_v37 = vpop.f32.mrb[55].mxu1 }
 0x1ff   : > { %v995_v30 = vpop.f32.mrb[26].mxu0 }
 0x200   : > { %2303 = vst [vmem:[%s3960_s12 + $0x138] sm:$0xff] %v995_v30  ;;  %v997_v32 = vpop.f32.mrb[27].mxu0  ;;  %v1506_v39 = vpop.f32.mrb[56].mxu1 }
 0x201   : > { %2304 = vst [vmem:[%s3960_s12 + $0x140] sm:$0xff] %v997_v32  ;;  %2350 = vst [vmem:[%s3960_s12 + $0x2b0] sm:$0xff] %v1506_v39  ;;  %v1508_v41 = vpop.f32.mrb[57].mxu1 }
 0x203   : > { %v1001_v34 = vpop.f32.mrb[28].mxu0 }
 0x204   : > { %2306 = vst [vmem:[%s3960_s12 + $0x150] sm:$0xff] %v1001_v34  ;;  %v1003_v36 = vpop.f32.mrb[29].mxu0  ;;  %v1511_v43 = vpop.f32.mrb[58].mxu1 }
 0x205   : > { %2307 = vst [vmem:[%s3960_s12 + $0x158] sm:$0xff] %v1003_v36  ;;  %2353 = vst [vmem:[%s3960_s12 + $0x2c8] sm:$0xff] %v1511_v43  ;;  %v1513_v45 = vpop.f32.mrb[59].mxu1 }
 0x207   : > { %v1007_v38 = vpop.f32.mrb[30].mxu0 }
 0x208   : > { %2309 = vst [vmem:[%s3960_s12 + $0x168] sm:$0xff] %v1007_v38  ;;  %v1009_v40 = vpop.f32.mrb[31].mxu0  ;;  %v1516_v47 = vpop.f32.mrb[60].mxu1 }
 0x209   : > { %2310 = vst [vmem:[%s3960_s12 + $0x170] sm:$0xff] %v1009_v40  ;;  %2356 = vst [vmem:[%s3960_s12 + $0x2e0] sm:$0xff] %v1516_v47  ;;  %v1518_v49 = vpop.f32.mrb[61].mxu1 }
 0x20b   : > { %v1013_v42 = vpop.f32.mrb[32].mxu0 }
 0x20c   : > { %2312 = vst [vmem:[%s3960_s12 + $0x180] sm:$0xff] %v1013_v42  ;;  %v1015_v44 = vpop.f32.mrb[33].mxu0  ;;  %v1521_v51 = vpop.f32.mrb[62].mxu1 }
 0x20d   : > { %2313 = vst [vmem:[%s3960_s12 + $0x188] sm:$0xff] %v1015_v44  ;;  %2359 = vst [vmem:[%s3960_s12 + $0x2f8] sm:$0xff] %v1521_v51  ;;  %v1523_v53 = vpop.f32.mrb[63].mxu1 }
 0x20f   : > { %v1019_v46 = vpop.f32.mrb[34].mxu0 }
 0x210   : > { %2315 = vst [vmem:[%s3960_s12 + $0x198] sm:$0xff] %v1019_v46  ;;  %v1021_v48 = vpop.f32.mrb[35].mxu0  ;;  %v1526_v55 = vpop.f32.mrb[64].mxu1 }
 0x211   : > { %2316 = vst [vmem:[%s3960_s12 + $0x1a0] sm:$0xff] %v1021_v48  ;;  %2362 = vst [vmem:[%s3960_s12 + $0x310] sm:$0xff] %v1526_v55  ;;  %v1528_v57 = vpop.f32.mrb[65].mxu1 }
 0x213   : > { %v1025_v50 = vpop.f32.mrb[36].mxu0 }
 0x214   : > { %2318 = vst [vmem:[%s3960_s12 + $0x1b0] sm:$0xff] %v1025_v50  ;;  %v1027_v52 = vpop.f32.mrb[37].mxu0  ;;  %v1531_v59 = vpop.f32.mrb[66].mxu1 }
 0x215   : > { %2319 = vst [vmem:[%s3960_s12 + $0x1b8] sm:$0xff] %v1027_v52  ;;  %2365 = vst [vmem:[%s3960_s12 + $0x328] sm:$0xff] %v1531_v59  ;;  %v1533_v61 = vpop.f32.mrb[67].mxu1 }
 0x217   : > { %v1031_v54 = vpop.f32.mrb[38].mxu0 }
 0x218   : > { %2321 = vst [vmem:[%s3960_s12 + $0x1c8] sm:$0xff] %v1031_v54  ;;  %v1033_v56 = vpop.f32.mrb[39].mxu0  ;;  %v1536_v63 = vpop.f32.mrb[68].mxu1 }
 0x219   : > { %2322 = vst [vmem:[%s3960_s12 + $0x1d0] sm:$0xff] %v1033_v56  ;;  %2368 = vst [vmem:[%s3960_s12 + $0x340] sm:$0xff] %v1536_v63  ;;  %v1538_v1 = vpop.f32.mrb[69].mxu1 }
 0x21b   : > { %v1037_v58 = vpop.f32.mrb[40].mxu0 }
 0x21c   : > { %2324 = vst [vmem:[%s3960_s12 + $0x1e0] sm:$0xff] %v1037_v58  ;;  %v1039_v60 = vpop.f32.mrb[41].mxu0  ;;  %v1541_v3 = vpop.f32.mrb[70].mxu1 }
 0x21d   : > { %2325 = vst [vmem:[%s3960_s12 + $0x1e8] sm:$0xff] %v1039_v60  ;;  %2371 = vst [vmem:[%s3960_s12 + $0x358] sm:$0xff] %v1541_v3  ;;  %v1543_v5 = vpop.f32.mrb[71].mxu1 }
 0x21f   : > { %v1043_v62 = vpop.f32.mrb[42].mxu0 }
 0x220   : > { %2327 = vst [vmem:[%s3960_s12 + $0x1f8] sm:$0xff] %v1043_v62  ;;  %v1045_v0 = vpop.f32.mrb[43].mxu0  ;;  %v1546_v7 = vpop.f32.mrb[72].mxu1 }
 0x221   : > { %2328 = vst [vmem:[%s3960_s12 + $0x200] sm:$0xff] %v1045_v0  ;;  %2374 = vst [vmem:[%s3960_s12 + $0x370] sm:$0xff] %v1546_v7  ;;  %v1548_v9 = vpop.f32.mrb[73].mxu1 }
 0x223   : > { %v1049_v2 = vpop.f32.mrb[44].mxu0 }
 0x224   : > { %2330 = vst [vmem:[%s3960_s12 + $0x210] sm:$0xff] %v1049_v2  ;;  %v1051_v4 = vpop.f32.mrb[45].mxu0  ;;  %v1551_v11 = vpop.f32.mrb[74].mxu1 }
 0x225   : > { %2331 = vst [vmem:[%s3960_s12 + $0x218] sm:$0xff] %v1051_v4  ;;  %2377 = vst [vmem:[%s3960_s12 + $0x388] sm:$0xff] %v1551_v11  ;;  %v1553_v13 = vpop.f32.mrb[75].mxu1 }
 0x227   : > { %v1055_v6 = vpop.f32.mrb[46].mxu0 }
 0x228   : > { %2333 = vst [vmem:[%s3960_s12 + $0x228] sm:$0xff] %v1055_v6  ;;  %v1057_v8 = vpop.f32.mrb[47].mxu0  ;;  %v1556_v15 = vpop.f32.mrb[76].mxu1 }
 0x229   : > { %2334 = vst [vmem:[%s3960_s12 + $0x230] sm:$0xff] %v1057_v8  ;;  %2380 = vst [vmem:[%s3960_s12 + $0x3a0] sm:$0xff] %v1556_v15  ;;  %v1558_v17 = vpop.f32.mrb[77].mxu1 }
 0x22b   : > { %v1061_v10 = vpop.f32.mrb[48].mxu0 }
 0x22c   : > { %2336 = vst [vmem:[%s3960_s12 + $0x240] sm:$0xff] %v1061_v10  ;;  %v1063_v12 = vpop.f32.mrb[49].mxu0  ;;  %v1561_v19 = vpop.f32.mrb[78].mxu1 }
 0x22d   : > { %2337 = vst [vmem:[%s3960_s12 + $0x248] sm:$0xff] %v1063_v12  ;;  %2383 = vst [vmem:[%s3960_s12 + $0x3b8] sm:$0xff] %v1561_v19  ;;  %v1563_v21 = vpop.f32.mrb[79].mxu1 }
 0x22f   : > { %v1067_v14 = vpop.f32.mrb[50].mxu0 }
 0x230   : > { %2339 = vst [vmem:[%s3960_s12 + $0x258] sm:$0xff] %v1067_v14  ;;  %v1069_v16 = vpop.f32.mrb[51].mxu0  ;;  %v1566_v23 = vpop.f32.mrb[80].mxu1 }
 0x231   : > { %2340 = vst [vmem:[%s3960_s12 + $0x260] sm:$0xff] %v1069_v16  ;;  %2386 = vst [vmem:[%s3960_s12 + $0x3d0] sm:$0xff] %v1566_v23  ;;  %v1568_v25 = vpop.f32.mrb[81].mxu1 }
 0x233   : > { %v1073_v18 = vpop.f32.mrb[52].mxu0 }
 0x234   : > { %2342 = vst [vmem:[%s3960_s12 + $0x270] sm:$0xff] %v1073_v18  ;;  %v1075_v20 = vpop.f32.mrb[53].mxu0  ;;  %v1571_v27 = vpop.f32.mrb[82].mxu1 }
 0x235   : > { %2343 = vst [vmem:[%s3960_s12 + $0x278] sm:$0xff] %v1075_v20  ;;  %2389 = vst [vmem:[%s3960_s12 + $0x3e8] sm:$0xff] %v1571_v27  ;;  %v1573_v29 = vpop.f32.mrb[83].mxu1 }
 0x237   : > { %v1079_v22 = vpop.f32.mrb[54].mxu0 }
 0x238   : > { %2345 = vst [vmem:[%s3960_s12 + $0x288] sm:$0xff] %v1079_v22  ;;  %v1081_v24 = vpop.f32.mrb[55].mxu0  ;;  %v1576_v31 = vpop.f32.mrb[84].mxu1 }
 0x239   : > { %2346 = vst [vmem:[%s3960_s12 + $0x290] sm:$0xff] %v1081_v24  ;;  %2392 = vst [vmem:[%s3960_s12 + $0x400] sm:$0xff] %v1576_v31  ;;  %v1578_v33 = vpop.f32.mrb[85].mxu1 }
 0x23b   : > { %v1085_v26 = vpop.f32.mrb[56].mxu0 }
 0x23c   : > { %2348 = vst [vmem:[%s3960_s12 + $0x2a0] sm:$0xff] %v1085_v26  ;;  %v1087_v28 = vpop.f32.mrb[57].mxu0  ;;  %v1581_v35 = vpop.f32.mrb[86].mxu1 }
 0x23d   : > { %2349 = vst [vmem:[%s3960_s12 + $0x2a8] sm:$0xff] %v1087_v28  ;;  %2395 = vst [vmem:[%s3960_s12 + $0x418] sm:$0xff] %v1581_v35  ;;  %v1583_v37 = vpop.f32.mrb[87].mxu1 }
 0x23f   : > { %v1091_v30 = vpop.f32.mrb[58].mxu0 }
 0x240   : > { %2351 = vst [vmem:[%s3960_s12 + $0x2b8] sm:$0xff] %v1091_v30  ;;  %v1093_v32 = vpop.f32.mrb[59].mxu0  ;;  %v1586_v39 = vpop.f32.mrb[88].mxu1 }
 0x241   : > { %2352 = vst [vmem:[%s3960_s12 + $0x2c0] sm:$0xff] %v1093_v32  ;;  %2398 = vst [vmem:[%s3960_s12 + $0x430] sm:$0xff] %v1586_v39  ;;  %v1588_v41 = vpop.f32.mrb[89].mxu1 }
 0x243   : > { %v1097_v34 = vpop.f32.mrb[60].mxu0 }
 0x244   : > { %2354 = vst [vmem:[%s3960_s12 + $0x2d0] sm:$0xff] %v1097_v34  ;;  %v1099_v36 = vpop.f32.mrb[61].mxu0  ;;  %v1591_v43 = vpop.f32.mrb[90].mxu1 }
 0x245   : > { %2355 = vst [vmem:[%s3960_s12 + $0x2d8] sm:$0xff] %v1099_v36  ;;  %2401 = vst [vmem:[%s3960_s12 + $0x448] sm:$0xff] %v1591_v43  ;;  %v1593_v45 = vpop.f32.mrb[91].mxu1 }
 0x247   : > { %v1103_v38 = vpop.f32.mrb[62].mxu0 }
 0x248   : > { %2357 = vst [vmem:[%s3960_s12 + $0x2e8] sm:$0xff] %v1103_v38  ;;  %v1105_v40 = vpop.f32.mrb[63].mxu0  ;;  %v1596_v47 = vpop.f32.mrb[92].mxu1 }
 0x249   : > { %2358 = vst [vmem:[%s3960_s12 + $0x2f0] sm:$0xff] %v1105_v40  ;;  %2404 = vst [vmem:[%s3960_s12 + $0x460] sm:$0xff] %v1596_v47  ;;  %v1598_v49 = vpop.f32.mrb[93].mxu1 }
 0x24b   : > { %v1109_v42 = vpop.f32.mrb[64].mxu0 }
 0x24c   : > { %2360 = vst [vmem:[%s3960_s12 + $0x300] sm:$0xff] %v1109_v42  ;;  %v1111_v44 = vpop.f32.mrb[65].mxu0  ;;  %v1601_v51 = vpop.f32.mrb[94].mxu1 }
 0x24d   : > { %2361 = vst [vmem:[%s3960_s12 + $0x308] sm:$0xff] %v1111_v44  ;;  %2407 = vst [vmem:[%s3960_s12 + $0x478] sm:$0xff] %v1601_v51  ;;  %v1603_v53 = vpop.f32.mrb[95].mxu1 }
 0x24f   : > { %v1115_v46 = vpop.f32.mrb[66].mxu0 }
 0x250   : > { %2363 = vst [vmem:[%s3960_s12 + $0x318] sm:$0xff] %v1115_v46  ;;  %v1117_v48 = vpop.f32.mrb[67].mxu0  ;;  %v1606_v55 = vpop.f32.mrb[96].mxu1 }
 0x251   : > { %2364 = vst [vmem:[%s3960_s12 + $0x320] sm:$0xff] %v1117_v48  ;;  %2410 = vst [vmem:[%s3960_s12 + $0x490] sm:$0xff] %v1606_v55  ;;  %v1608_v57 = vpop.f32.mrb[97].mxu1 }
 0x253   : > { %v1121_v50 = vpop.f32.mrb[68].mxu0 }
 0x254   : > { %2366 = vst [vmem:[%s3960_s12 + $0x330] sm:$0xff] %v1121_v50  ;;  %v1123_v52 = vpop.f32.mrb[69].mxu0  ;;  %v1611_v59 = vpop.f32.mrb[98].mxu1 }
 0x255   : > { %2367 = vst [vmem:[%s3960_s12 + $0x338] sm:$0xff] %v1123_v52  ;;  %2413 = vst [vmem:[%s3960_s12 + $0x4a8] sm:$0xff] %v1611_v59  ;;  %v1613_v61 = vpop.f32.mrb[99].mxu1 }
 0x257   : > { %v1127_v54 = vpop.f32.mrb[70].mxu0 }
 0x258   : > { %2369 = vst [vmem:[%s3960_s12 + $0x348] sm:$0xff] %v1127_v54  ;;  %v1129_v56 = vpop.f32.mrb[71].mxu0  ;;  %v1616_v63 = vpop.f32.mrb[100].mxu1 }
 0x259   : > { %2370 = vst [vmem:[%s3960_s12 + $0x350] sm:$0xff] %v1129_v56  ;;  %2416 = vst [vmem:[%s3960_s12 + $0x4c0] sm:$0xff] %v1616_v63  ;;  %v1618_v1 = vpop.f32.mrb[101].mxu1 }
 0x25b   : > { %v1133_v58 = vpop.f32.mrb[72].mxu0 }
 0x25c   : > { %2372 = vst [vmem:[%s3960_s12 + $0x360] sm:$0xff] %v1133_v58  ;;  %v1135_v60 = vpop.f32.mrb[73].mxu0  ;;  %v1621_v3 = vpop.f32.mrb[102].mxu1 }
 0x25d   : > { %2373 = vst [vmem:[%s3960_s12 + $0x368] sm:$0xff] %v1135_v60  ;;  %2419 = vst [vmem:[%s3960_s12 + $0x4d8] sm:$0xff] %v1621_v3  ;;  %v1623_v5 = vpop.f32.mrb[103].mxu1 }
 0x25f   : > { %v1139_v62 = vpop.f32.mrb[74].mxu0 }
 0x260   : > { %2375 = vst [vmem:[%s3960_s12 + $0x378] sm:$0xff] %v1139_v62  ;;  %v1141_v0 = vpop.f32.mrb[75].mxu0  ;;  %v1626_v7 = vpop.f32.mrb[104].mxu1 }
 0x261   : > { %2376 = vst [vmem:[%s3960_s12 + $0x380] sm:$0xff] %v1141_v0  ;;  %2422 = vst [vmem:[%s3960_s12 + $0x4f0] sm:$0xff] %v1626_v7  ;;  %v1628_v9 = vpop.f32.mrb[105].mxu1 }
 0x263   : > { %v1145_v2 = vpop.f32.mrb[76].mxu0 }
 0x264   : > { %2378 = vst [vmem:[%s3960_s12 + $0x390] sm:$0xff] %v1145_v2  ;;  %v1147_v4 = vpop.f32.mrb[77].mxu0  ;;  %v1631_v11 = vpop.f32.mrb[106].mxu1 }
 0x265   : > { %2379 = vst [vmem:[%s3960_s12 + $0x398] sm:$0xff] %v1147_v4  ;;  %2425 = vst [vmem:[%s3960_s12 + $0x508] sm:$0xff] %v1631_v11  ;;  %v1633_v13 = vpop.f32.mrb[107].mxu1 }
 0x267   : > { %v1151_v6 = vpop.f32.mrb[78].mxu0 }
 0x268   : > { %2381 = vst [vmem:[%s3960_s12 + $0x3a8] sm:$0xff] %v1151_v6  ;;  %v1153_v8 = vpop.f32.mrb[79].mxu0  ;;  %v1636_v15 = vpop.f32.mrb[108].mxu1 }
 0x269   : > { %2382 = vst [vmem:[%s3960_s12 + $0x3b0] sm:$0xff] %v1153_v8  ;;  %2428 = vst [vmem:[%s3960_s12 + $0x520] sm:$0xff] %v1636_v15  ;;  %v1638_v17 = vpop.f32.mrb[109].mxu1 }
 0x26b   : > { %v1157_v10 = vpop.f32.mrb[80].mxu0 }
 0x26c   : > { %2384 = vst [vmem:[%s3960_s12 + $0x3c0] sm:$0xff] %v1157_v10  ;;  %v1159_v12 = vpop.f32.mrb[81].mxu0  ;;  %v1641_v19 = vpop.f32.mrb[110].mxu1 }
 0x26d   : > { %2385 = vst [vmem:[%s3960_s12 + $0x3c8] sm:$0xff] %v1159_v12  ;;  %2431 = vst [vmem:[%s3960_s12 + $0x538] sm:$0xff] %v1641_v19  ;;  %v1643_v21 = vpop.f32.mrb[111].mxu1 }
 0x26f   : > { %v1163_v14 = vpop.f32.mrb[82].mxu0 }
 0x270   : > { %2387 = vst [vmem:[%s3960_s12 + $0x3d8] sm:$0xff] %v1163_v14  ;;  %v1165_v16 = vpop.f32.mrb[83].mxu0  ;;  %v1646_v23 = vpop.f32.mrb[112].mxu1 }
 0x271   : > { %2388 = vst [vmem:[%s3960_s12 + $0x3e0] sm:$0xff] %v1165_v16  ;;  %2434 = vst [vmem:[%s3960_s12 + $0x550] sm:$0xff] %v1646_v23  ;;  %v1648_v25 = vpop.f32.mrb[113].mxu1 }
 0x273   : > { %v1169_v18 = vpop.f32.mrb[84].mxu0 }
 0x274   : > { %2390 = vst [vmem:[%s3960_s12 + $0x3f0] sm:$0xff] %v1169_v18  ;;  %v1171_v20 = vpop.f32.mrb[85].mxu0  ;;  %v1651_v27 = vpop.f32.mrb[114].mxu1 }
 0x275   : > { %2391 = vst [vmem:[%s3960_s12 + $0x3f8] sm:$0xff] %v1171_v20  ;;  %2437 = vst [vmem:[%s3960_s12 + $0x568] sm:$0xff] %v1651_v27  ;;  %v1653_v29 = vpop.f32.mrb[115].mxu1 }
 0x277   : > { %v1175_v22 = vpop.f32.mrb[86].mxu0 }
 0x278   : > { %2393 = vst [vmem:[%s3960_s12 + $0x408] sm:$0xff] %v1175_v22  ;;  %v1177_v24 = vpop.f32.mrb[87].mxu0  ;;  %v1656_v31 = vpop.f32.mrb[116].mxu1 }
 0x279   : > { %2394 = vst [vmem:[%s3960_s12 + $0x410] sm:$0xff] %v1177_v24  ;;  %2440 = vst [vmem:[%s3960_s12 + $0x580] sm:$0xff] %v1656_v31  ;;  %v1658_v33 = vpop.f32.mrb[117].mxu1 }
 0x27b   : > { %v1181_v26 = vpop.f32.mrb[88].mxu0 }
 0x27c   : > { %2396 = vst [vmem:[%s3960_s12 + $0x420] sm:$0xff] %v1181_v26  ;;  %v1183_v28 = vpop.f32.mrb[89].mxu0  ;;  %v1661_v35 = vpop.f32.mrb[118].mxu1 }
 0x27d   : > { %2397 = vst [vmem:[%s3960_s12 + $0x428] sm:$0xff] %v1183_v28  ;;  %2443 = vst [vmem:[%s3960_s12 + $0x598] sm:$0xff] %v1661_v35  ;;  %v1663_v37 = vpop.f32.mrb[119].mxu1 }
 0x27f   : > { %v1187_v30 = vpop.f32.mrb[90].mxu0 }
 0x280   : > { %2399 = vst [vmem:[%s3960_s12 + $0x438] sm:$0xff] %v1187_v30  ;;  %v1189_v32 = vpop.f32.mrb[91].mxu0  ;;  %v1666_v39 = vpop.f32.mrb[120].mxu1 }
 0x281   : > { %2400 = vst [vmem:[%s3960_s12 + $0x440] sm:$0xff] %v1189_v32  ;;  %2446 = vst [vmem:[%s3960_s12 + $0x5b0] sm:$0xff] %v1666_v39  ;;  %v1668_v41 = vpop.f32.mrb[121].mxu1 }
 0x283   : > { %v1193_v34 = vpop.f32.mrb[92].mxu0 }
 0x284   : > { %2402 = vst [vmem:[%s3960_s12 + $0x450] sm:$0xff] %v1193_v34  ;;  %v1195_v36 = vpop.f32.mrb[93].mxu0  ;;  %v1671_v43 = vpop.f32.mrb[122].mxu1 }
 0x285   : > { %2403 = vst [vmem:[%s3960_s12 + $0x458] sm:$0xff] %v1195_v36  ;;  %2449 = vst [vmem:[%s3960_s12 + $0x5c8] sm:$0xff] %v1671_v43  ;;  %v1673_v45 = vpop.f32.mrb[123].mxu1 }
 0x287   : > { %v1199_v38 = vpop.f32.mrb[94].mxu0 }
 0x288   : > { %2405 = vst [vmem:[%s3960_s12 + $0x468] sm:$0xff] %v1199_v38  ;;  %v1201_v40 = vpop.f32.mrb[95].mxu0  ;;  %v1676_v47 = vpop.f32.mrb[124].mxu1 }
 0x289   : > { %2406 = vst [vmem:[%s3960_s12 + $0x470] sm:$0xff] %v1201_v40  ;;  %2452 = vst [vmem:[%s3960_s12 + $0x5e0] sm:$0xff] %v1676_v47  ;;  %v1678_v49 = vpop.f32.mrb[125].mxu1 }
 0x28b   : > { %v1205_v42 = vpop.f32.mrb[96].mxu0 }
 0x28c   : > { %2408 = vst [vmem:[%s3960_s12 + $0x480] sm:$0xff] %v1205_v42  ;;  %v1207_v44 = vpop.f32.mrb[97].mxu0  ;;  %v1681_v51 = vpop.f32.mrb[126].mxu1 }
 0x28d   : > { %2409 = vst [vmem:[%s3960_s12 + $0x488] sm:$0xff] %v1207_v44  ;;  %2455 = vst [vmem:[%s3960_s12 + $0x5f8] sm:$0xff] %v1681_v51  ;;  %v1683_v53 = vpop.f32.mrb[127].mxu1 }
 0x28f   : > { %v1211_v46 = vpop.f32.mrb[98].mxu0 }
 0x290   : > { %2411 = vst [vmem:[%s3960_s12 + $0x498] sm:$0xff] %v1211_v46  ;;  %v1213_v48 = vpop.f32.mrb[99].mxu0 }
 0x291   : > { %2412 = vst [vmem:[%s3960_s12 + $0x4a0] sm:$0xff] %v1213_v48 }
 0x293   : > { %v1217_v50 = vpop.f32.mrb[100].mxu0 }
 0x294   : > { %2414 = vst [vmem:[%s3960_s12 + $0x4b0] sm:$0xff] %v1217_v50  ;;  %v1219_v52 = vpop.f32.mrb[101].mxu0 }
 0x295   : > { %2415 = vst [vmem:[%s3960_s12 + $0x4b8] sm:$0xff] %v1219_v52 }
 0x297   : > { %v1223_v54 = vpop.f32.mrb[102].mxu0 }
 0x298   : > { %2417 = vst [vmem:[%s3960_s12 + $0x4c8] sm:$0xff] %v1223_v54  ;;  %v1225_v55 = vpop.f32.mrb[103].mxu0 }
 0x299   : > { %2418 = vst [vmem:[%s3960_s12 + $0x4d0] sm:$0xff] %v1225_v55 }
 0x29b   : > { %v1229_v56 = vpop.f32.mrb[104].mxu0 }
 0x29c   : > { %2420 = vst [vmem:[%s3960_s12 + $0x4e0] sm:$0xff] %v1229_v56  ;;  %v1231_v57 = vpop.f32.mrb[105].mxu0 }
 0x29d   : > { %2421 = vst [vmem:[%s3960_s12 + $0x4e8] sm:$0xff] %v1231_v57 }
 0x29f   : > { %v1235_v58 = vpop.f32.mrb[106].mxu0 }
 0x2a0   : > { %2423 = vst [vmem:[%s3960_s12 + $0x4f8] sm:$0xff] %v1235_v58  ;;  %v1237_v59 = vpop.f32.mrb[107].mxu0 }
 0x2a1   : > { %2424 = vst [vmem:[%s3960_s12 + $0x500] sm:$0xff] %v1237_v59 }
 0x2a3   : > { %v1241_v60 = vpop.f32.mrb[108].mxu0 }
 0x2a4   : > { %2426 = vst [vmem:[%s3960_s12 + $0x510] sm:$0xff] %v1241_v60  ;;  %v1243_v61 = vpop.f32.mrb[109].mxu0 }
 0x2a5   : > { %2427 = vst [vmem:[%s3960_s12 + $0x518] sm:$0xff] %v1243_v61 }
 0x2a7   : > { %v1247_v62 = vpop.f32.mrb[110].mxu0 }
 0x2a8   : > { %2429 = vst [vmem:[%s3960_s12 + $0x528] sm:$0xff] %v1247_v62  ;;  %v1249_v63 = vpop.f32.mrb[111].mxu0 }
 0x2a9   : > { %2430 = vst [vmem:[%s3960_s12 + $0x530] sm:$0xff] %v1249_v63 }
 0x2ab   : > { %v1253_v0 = vpop.f32.mrb[112].mxu0 }
 0x2ac   : > { %2432 = vst [vmem:[%s3960_s12 + $0x540] sm:$0xff] %v1253_v0  ;;  %v1255_v1 = vpop.f32.mrb[113].mxu0 }
 0x2ad   : > { %2433 = vst [vmem:[%s3960_s12 + $0x548] sm:$0xff] %v1255_v1 }
 0x2af   : > { %v1259_v2 = vpop.f32.mrb[114].mxu0 }
 0x2b0   : > { %2435 = vst [vmem:[%s3960_s12 + $0x558] sm:$0xff] %v1259_v2  ;;  %v1261_v3 = vpop.f32.mrb[115].mxu0 }
 0x2b1   : > { %2436 = vst [vmem:[%s3960_s12 + $0x560] sm:$0xff] %v1261_v3 }
 0x2b3   : > { %v1265_v4 = vpop.f32.mrb[116].mxu0 }
 0x2b4   : > { %2438 = vst [vmem:[%s3960_s12 + $0x570] sm:$0xff] %v1265_v4  ;;  %v1267_v5 = vpop.f32.mrb[117].mxu0 }
 0x2b5   : > { %2439 = vst [vmem:[%s3960_s12 + $0x578] sm:$0xff] %v1267_v5 }
 0x2b7   : > { %v1271_v6 = vpop.f32.mrb[118].mxu0 }
 0x2b8   : > { %2441 = vst [vmem:[%s3960_s12 + $0x588] sm:$0xff] %v1271_v6  ;;  %v1273_v7 = vpop.f32.mrb[119].mxu0 }
 0x2b9   : > { %2442 = vst [vmem:[%s3960_s12 + $0x590] sm:$0xff] %v1273_v7 }
 0x2bb   : > { %v1277_v8 = vpop.f32.mrb[120].mxu0 }
 0x2bc   : > { %2444 = vst [vmem:[%s3960_s12 + $0x5a0] sm:$0xff] %v1277_v8  ;;  %v1279_v9 = vpop.f32.mrb[121].mxu0 }
 0x2bd   : > { %2445 = vst [vmem:[%s3960_s12 + $0x5a8] sm:$0xff] %v1279_v9 }
 0x2bf   : > { %v1283_v10 = vpop.f32.mrb[122].mxu0 }
 0x2c0   : > { %2447 = vst [vmem:[%s3960_s12 + $0x5b8] sm:$0xff] %v1283_v10  ;;  %v1285_v11 = vpop.f32.mrb[123].mxu0 }
 0x2c1   : > { %2448 = vst [vmem:[%s3960_s12 + $0x5c0] sm:$0xff] %v1285_v11 }
 0x2c3   : > { %v1289_v12 = vpop.f32.mrb[124].mxu0 }
 0x2c4   : > { %2450 = vst [vmem:[%s3960_s12 + $0x5d0] sm:$0xff] %v1289_v12  ;;  %v1291_v13 = vpop.f32.mrb[125].mxu0 }
 0x2c5   : > { %2451 = vst [vmem:[%s3960_s12 + $0x5d8] sm:$0xff] %v1291_v13 }
 0x2c7   : > { %v1295_v14 = vpop.f32.mrb[126].mxu0 }
 0x2c8   : > { %2453 = vst [vmem:[%s3960_s12 + $0x5e8] sm:$0xff] %v1295_v14  ;;  %v1297_v15 = vpop.f32.mrb[127].mxu0 }
 0x2c9   : > { %2454 = vst [vmem:[%s3960_s12 + $0x5f0] sm:$0xff] %v1297_v15 }
 0x2ca   : > { %2923 = shalt.err (!%p2920_p5)
}
 0x2cb   : > { %s2924_s28 = scalar_lea.hbm %s4282_s2, 24576  ;;  %s2928_s29 = scalar_lea.hbm %s4408_s25, 98304 }
 0x2cc   : > { %p2925_p0 = scmp.ne.s32.totalorder %s4282_s2, %s2924_s28  ;;  %p2929_p7 = scmp.lt.u32.totalorder %s4282_s2, %s4408_s25 }
 0x2cd   : > { %p2930_p13 = scmp.lt.u32.totalorder %s2928_s29, %s2924_s28  ;;  %p2932_p1 = scmp.lt.u32.totalorder %s2924_s28, %s4282_s2 }
 0x2ce   : > { %p2926_p4 = pnand %p2925_p0, %p4409_p12 }
 0x2cf   : > { %p2931_p6 = por %p2930_p13, %p2929_p7 }
 0x2d0   : > { %p2927_p3 = pneg %p2926_p4 }
 0x2d1   : > { %p2933_p9 = por %p2932_p1, %p2931_p6 }
 0x2d3   : > { %p2934_p11 = pnand %p2933_p9, %p2927_p3 }
 0x2d5   : > { %2937 = shalt.err (!%p2934_p11)
}
 0x2d6   : > { %s3067_s26 = smov 384   ;;  %s3068_s18 = smov 768  }
 0x2d7   : > { %s3069_s6 = smov 24  }
 0x2d8   : > { %2718 = dma.vmem_to_hbm [thread:$0]  (%p4409_p12), %s4284_s27, 24576, %s4282_s2, %s4290_s24, %s3067_s26, %s3068_s18, %s3069_s6  }
 0x2d9 PF: > { %p2732_p2 = scmp.ge.s32.totalorder %s3060_s22, 2  ;;  %s2488_s19 = sand.u32 1, %s3008_s9  }
 0x2da   : > { %p4410_p10 = scmp.ne.s32.totalorder %s4400_s3, 0  ;;  %s2489_s5 = scalar_lea.sflag [#allocation5], %s2488_s19 }
 0x2dc   : > { %p2728_p8 = pnand %p2732_p2, %p4410_p10 }
 0x2de   : > { %3003 = dma.done.wait (!%p2728_p8), %s2489_s5, 24576  }
 0x2df   : > { %3005 = vsyncadd (!%p2728_p8), %s2489_s5, 4294942720  ;;  %s21_s22 = sadd.s32 1, %s3060_s22   ;;  %s4412_s18 = sld [smem:[#allocation13_spill]] }
 0x2e0   : > { %p4319_p5 = scmp.ge.s32.totalorder %s21_s22, 6   ;;  %s4413_s19 = sld [smem:[#allocation14_spill]] }
 0x2e1   : > { %s4414_s20 = sld [smem:[#allocation15_spill]]  ;;  %s4415_s21 = sld [smem:[#allocation16_spill]] }
 0x2e2   : > { %s4417_s9 = smov %s3012_s10  ;;  %s4418_s10 = smov %s3016_s11 }
 0x2e3   : > { %s4419_s11 = smov %s3279_s30  ;;  %s4420_s12 = smov %s3024_s13 }
 0x2e4   : > { %s4421_s13 = smov %s3028_s14  ;;  %s4422_s14 = smov %s3261_s23 }
 0x2e5   : > { %s4423_s15 = smov %s3036_s16  ;;  %s4424_s16 = smov %s3040_s17 }
 0x2e6   : > { %s4425_s17 = smov %s3276_s0  ;;  %20 = sbr.rel (!%p4319_p5) target bundleno = 15 (0xf), region = 94 }
 0x2ed   :  { %2494 = vsyncpa [#allocation4], 1 }
 0x2ee   :  { %2496 = vsyncpa [#allocation4 + $0x1], 1 }
 0x2ef   :  { %2497 = vsyncpa [#allocation7], 1 }
 0x2f0   :  { %2499 = vsyncpa [#allocation7 + $0x1], 1 }
 0x2f1   :  { %2500 = vsyncpa [#allocation5], 1 }
 0x2f2   :  { %2502 = vsyncpa [#allocation5 + $0x1], 1 }

</bundles_post_ra>
